<compile_context>
chip_gen: v6e
topology: v6e:2x2x1
jax: 0.10.0
libtpu: 0.0.40
codegen_flags: <defaults>
</compile_context>

<pallas_src>
import jax
import jax.numpy as jnp
from jax import lax
from jax.experimental import pallas as pl
from jax.experimental.pallas import tpu as pltpu

PAD_IDX, SOS_IDX, EOS_IDX = 0, 1, 2
NEG = -10000.0
LANE = 128


def _crf_fwd_kernel(bmax_ref, len_ref, y_ref, trans_ref, out_ref,
                    u_ref, m_ref, et_ref, tmax_ref):
    """One grid step == one (batch-block, time-block) tile of the recursion.

    Grid: (b_pad // TB, t_pad // TS); axis 0 = batch blocks ("parallel"),
    axis 1 = time blocks ("arbitrary", sequential recurrence).

    bmax_ref  : (n_bb,)   int32 SMEM  per-batch-block max sequence length
    len_ref   : (1, TB)   int32       sequence lengths (batch on lanes)
    y_ref     : (TS, NT, TB) f32      emissions, time-major, batch on lanes
    trans_ref : (NT, NT)  f32         transitions, trans[i, j]: tag j -> tag i
    out_ref   : (1, TB)   f32         final log-partition per batch column
    u_ref     : (NT, TB)  VMEM        exp(score - m) carry
    m_ref     : (1, TB)   VMEM        per-column log-shift carry
    et_ref    : (NT, NT)  VMEM        exp(trans - tmax), filled at ti == 0
    tmax_ref  : (1, 1)    SMEM        max(trans), filled at ti == 0
    """
    bi = pl.program_id(0)
    ti = pl.program_id(1)
    TS, NT, TB = y_ref.shape
    t0 = ti * TS

    @pl.when(ti == 0)
    def _init():
        # The only place trans is ever touched: hoist the NT^2 exp and the
        # full max reduce out of the recursion (once per batch block).
        trans = trans_ref[...]
        tmax = jnp.max(trans)
        tmax_ref[0, 0] = tmax
        et_ref[...] = jnp.exp(trans - tmax)
        row = lax.broadcasted_iota(jnp.int32, (NT, TB), 0)
        # score = m + log(u); init score: 0 at SOS, -inf (-10000 underflowed)
        # elsewhere -> u = one-hot(SOS), m = 0.
        u_ref[...] = jnp.where(row == SOS_IDX, 1.0, 0.0).astype(jnp.float32)
        m_ref[...] = jnp.zeros((1, TB), jnp.float32)

    # Skip whole time blocks once every row of this batch block has finished.
    @pl.when(t0 < bmax_ref[bi])
    def _run():
        e = et_ref[...]                     # (NT, NT)
        lens = len_ref[...]                 # (1, TB) int32
        tmax = tmax_ref[0, 0]               # scalar from SMEM
        u = u_ref[...]                      # (NT, TB)
        m = m_ref[...]                      # (1, TB)

        # TS recursion steps per grid iteration; static Python loop is
        # unrolled at trace time, y_ref[s] is a dense leading-dim offset.
        for s in range(TS):
            y_s = y_ref[s]                                     # (NT, TB)
            # acc[i, b] = sum_j exp(trans[i,j]-tmax) * u[j, b]   -> MXU
            acc = lax.dot_general(
                e, u, dimension_numbers=(((1,), (0,)), ((), ())),
                preferred_element_type=jnp.float32)            # (NT, TB)
            c = jnp.max(y_s, axis=0, keepdims=True)            # (1, TB)
            w = jnp.exp(y_s - c)                               # only big EUP op
            un = acc * w                                       # (NT, TB)
            # Renormalize so max_i(u) ~ 1; the approx reciprocal cancels
            # exactly because m is compensated with -log(r) (same r).
            sc = jnp.maximum(jnp.max(un, axis=0, keepdims=True), 1e-30)
            r = pl.reciprocal(sc, approx=True)                 # (1, TB)
            m_new = m + (tmax + c - jnp.log(r))                # (1, TB)
            u_new = un * r                                     # (NT, TB)
            keep = lens > (t0 + s)                             # (1, TB) bool
            u = jnp.where(keep, u_new, u)
            m = jnp.where(keep, m_new, m)

        u_ref[...] = u
        m_ref[...] = m

    @pl.when(ti == pl.num_programs(1) - 1)
    def _finalize():
        tot = jnp.sum(u_ref[...], axis=0, keepdims=True)       # (1, TB)
        out_ref[...] = m_ref[...] + jnp.log(jnp.maximum(tot, 1e-30))


def crf_gan_forward(y, lengths, trans, *, time_block=32, batch_block=None,
                    emissions_vmem_budget=24 * 1024 * 1024):
    """CRF log-partition Z (crf_gan.forward).

    y: (B, T, NT) f32 emissions; lengths: (B,) int prefix-mask lengths (as
    produced by x.gt(0) in the module); trans: (NT, NT) f32.  Returns (B,) f32.
    """
    B, T, NT = y.shape
    y = jnp.asarray(y, jnp.float32)
    trans = jnp.asarray(trans, jnp.float32)
    lengths = jnp.asarray(lengths, jnp.int32)

    # --- batch tile: lane-dense (multiple of 128); prefer >= 2 blocks so
    #     v7x's second TensorCore gets work (harmless on v5e/v6e).
    b128 = pl.cdiv(B, LANE) * LANE
    if batch_block is None:
        tb = max(LANE, pl.cdiv(pl.cdiv(b128, 2), LANE) * LANE)
    else:
        tb = max(LANE, (int(batch_block) // LANE) * LANE)
    tb = min(tb, b128)

    # --- time tile (leading dim of the emissions block: no (8,128) rule).
    ts = max(1, min(int(time_block), T))

    # --- VMEM budget: double-buffered emissions tile must fit (v7x: 64 MiB
    #     physical; keep it well under).
    def _em_bytes(tb_, ts_):
        return 2 * tb_ * ts_ * NT * 4
    while _em_bytes(tb, ts) > emissions_vmem_budget and ts > 8:
        ts = max(8, ts // 2)
    while _em_bytes(tb, ts) > emissions_vmem_budget and tb > LANE:
        tb = max(LANE, tb // 2)

    b_pad = pl.cdiv(B, tb) * tb
    t_pad = pl.cdiv(T, ts) * ts
    n_bb = b_pad // tb
    n_tb = t_pad // ts

    if (b_pad, t_pad) != (B, T):
        # Padded rows get length 0 and padded time steps satisfy t >= length,
        # so the in-kernel mask keeps them inert.
        y = jnp.pad(y, ((0, b_pad - B), (0, t_pad - T), (0, 0)))
        lengths = jnp.pad(lengths, (0, b_pad - B))

    # One-time HBM transpose to time-major, batch-on-lanes layout.
    y_t = jnp.transpose(y, (1, 2, 0))                    # (t_pad, NT, b_pad)
    lens2d = lengths.reshape(1, b_pad)                   # (1, b_pad)
    blk_max = jnp.max(lengths.reshape(n_bb, tb), axis=1).astype(jnp.int32)

    est = (2 * tb * ts * NT            # emissions (double-buffered)
           + 4 * 8 * tb                # lens + out blocks (sublane-padded)
           + NT * tb + 8 * tb          # u + m scratch
           + 2 * NT * NT) * 4          # trans block + E scratch
    vmem_limit = int(min(max(2 * est, 32 * 1024 * 1024), 48 * 1024 * 1024))

    out = pl.pallas_call(
        _crf_fwd_kernel,
        out_shape=jax.ShapeDtypeStruct((1, b_pad), jnp.float32),
        grid_spec=pltpu.PrefetchScalarGridSpec(
            num_scalar_prefetch=1,                       # blk_max -> SMEM
            grid=(n_bb, n_tb),
            in_specs=[
                pl.BlockSpec((1, tb), lambda b, t, bm: (0, b)),          # lens
                pl.BlockSpec((ts, NT, tb), lambda b, t, bm: (t, 0, b)),  # y
                pl.BlockSpec((NT, NT), lambda b, t, bm: (0, 0)),         # trans
            ],
            out_specs=pl.BlockSpec((1, tb), lambda b, t, bm: (0, b)),
            scratch_shapes=[
                pltpu.VMEM((NT, tb), jnp.float32),   # u carry
                pltpu.VMEM((1, tb), jnp.float32),    # m carry
                pltpu.VMEM((NT, NT), jnp.float32),   # exp(trans - tmax)
                pltpu.SMEM((1, 1), jnp.float32),     # tmax
            ],
        ),
        compiler_params=pltpu.CompilerParams(
            # Batch blocks are independent -> "parallel" (v7x: 2 TensorCores).
            # Time is a sequential recurrence -> "arbitrary".
            dimension_semantics=("parallel", "arbitrary"),
            vmem_limit_bytes=vmem_limit),
    )(blk_max, lens2d, y_t, trans)
    return out[0, :B]


def crf_gan_forward_ref(y, mask, trans):
    """Pure-JAX reference matching the PyTorch forward exactly."""
    B, T, NT = y.shape

    def lse(x):
        m = jnp.max(x, -1)
        return m + jnp.log(jnp.sum(jnp.exp(x - m[..., None]), -1))

    score = jnp.full((B, NT), NEG, jnp.float32).at[:, SOS_IDX].set(0.0)
    for t in range(T):
        m_t = mask[:, t][:, None]
        s = score[:, None, :] + y[:, t][:, :, None] + trans[None, :, :]
        st = lse(s)
        score = st * m_t + score * (1.0 - m_t)
    return lse(score)


def make_trans(key, num_tags):
    """Deterministic init matching crf_gan.__init__ (no tdic)."""
    trans = jax.random.normal(key, (num_tags, num_tags), jnp.float32)
    trans = trans.at[SOS_IDX, :].set(NEG)
    trans = trans.at[:, EOS_IDX].set(NEG)
    trans = trans.at[:, PAD_IDX].set(NEG)
    trans = trans.at[PAD_IDX, :].set(NEG)
    trans = trans.at[PAD_IDX, EOS_IDX].set(0.0)
    trans = trans.at[PAD_IDX, PAD_IDX].set(0.0)
    return trans


if __name__ == "__main__":
    key = jax.random.PRNGKey(0)

    configs = [
        # single batch block (2 -> 128 lanes), single time block
        dict(B=2, T=12, NT=8, time_block=32, batch_block=None, short_tail=False),
        # time-blocked recursion: carry across grid steps + time padding
        dict(B=6, T=20, NT=16, time_block=8, batch_block=None, short_tail=False),
        # two batch blocks ("parallel" axis) + skipped dead time blocks
        dict(B=160, T=24, NT=16, time_block=8, batch_block=128, short_tail=True),
    ]

    for idx, cfg in enumerate(configs):
        B, T, NT = cfg["B"], cfg["T"], cfg["NT"]
        k_trans, k_y, k_len, key = jax.random.split(key, 4)

        trans = make_trans(k_trans, NT)
        y = jax.random.normal(k_y, (B, T, NT), jnp.float32)
        lengths = jax.random.randint(k_len, (B,), 1, T + 1)
        if cfg["short_tail"]:
            # rows of the second batch block finish by t=8, so its later time
            # blocks are skipped entirely by the in-kernel guard
            lengths = jnp.where(jnp.arange(B) >= 128,
                                jnp.minimum(lengths, 8), lengths)
        mask = (jnp.arange(T)[None, :] < lengths[:, None]).astype(jnp.float32)

        out = crf_gan_forward(y, lengths, trans,
                              time_block=cfg["time_block"],
                              batch_block=cfg["batch_block"])
        out = jax.block_until_ready(out)

        ref = crf_gan_forward_ref(y, mask, trans)
        assert out.shape == (B,)
        assert jnp.allclose(out, ref, atol=1e-3, rtol=1e-3), (idx, out, ref)

    print("KERNEL_OK")
</pallas_src>

<mosaic_0001>
module attributes {stable_mosaic.version = 11 : i64} {
  func.func @_crf_fwd_kernel(%arg0: i32, %arg1: i32, %arg2: memref<1xi32, #tpu.memory_space<smem>>, %arg3: memref<1x128xi32, #tpu.memory_space<vmem>>, %arg4: memref<12x8x128xf32, #tpu.memory_space<vmem>>, %arg5: memref<8x8xf32, #tpu.memory_space<vmem>>, %arg6: memref<1x128xf32, #tpu.memory_space<vmem>>, %arg7: memref<8x128xf32, #tpu.memory_space<vmem>>, %arg8: memref<1x128xf32, #tpu.memory_space<vmem>>, %arg9: memref<8x8xf32, #tpu.memory_space<vmem>>, %arg10: memref<1x1xf32, #tpu.memory_space<smem>>) attributes {dimension_semantics = [#tpu.dimension_semantics<parallel>, #tpu.dimension_semantics<arbitrary>], iteration_bounds = array<i64: 1, 1>, scalar_prefetch = 1 : i64, scratch_operands = 4 : i64, tpu.core_type = #tpu.core_type<tc>, window_params = [{transform_indices = @transform_0, window_bounds = array<i64: 1, 128>}, {transform_indices = @transform_1, window_bounds = array<i64: 12, 8, 128>}, {pipeline_mode = #tpu.pipeline_mode<synchronous>, transform_indices = @transform_2, window_bounds = array<i64: 8, 8>}, {transform_indices = @transform_3, window_bounds = array<i64: 1, 128>}]} {
    %c12_i32 = arith.constant 12 : i32
    %0 = arith.muli %arg1, %c12_i32 : i32
    %c0_i32 = arith.constant 0 : i32
    %1 = arith.cmpi eq, %arg1, %c0_i32 : i32
    %2 = arith.extui %1 : i1 to i32
    %c0_i32_0 = arith.constant 0 : i32
    %3 = arith.cmpi ne, %2, %c0_i32_0 : i32
    scf.if %3 {
      %c0 = arith.constant 0 : index
      %c0_4 = arith.constant 0 : index
      %12 = vector.load %arg5[%c0, %c0_4] : memref<8x8xf32, #tpu.memory_space<vmem>>, vector<8x8xf32>
      %13 = vector.shape_cast %12 : vector<8x8xf32> to vector<1x8x8xf32>
      %cst = arith.constant dense<0xFF800000> : vector<1xf32>
      %14 = vector.multi_reduction <maximumf>, %13, %cst [1, 2] : vector<1x8x8xf32> to vector<1xf32>
      %15 = vector.shape_cast %14 : vector<1xf32> to vector<1x1x1xf32>
      %16 = vector.extract %15[0, 0, 0] : f32 from vector<1x1x1xf32>
      %c0_5 = arith.constant 0 : index
      %c0_6 = arith.constant 0 : index
      %17 = memref.load %arg10[%c0_5, %c0_6] : memref<1x1xf32, #tpu.memory_space<smem>>
      memref.store %16, %arg10[%c0_5, %c0_6] : memref<1x1xf32, #tpu.memory_space<smem>>
      %18 = vector.broadcast %16 : f32 to vector<8x8xf32>
      %19 = arith.subf %12, %18 : vector<8x8xf32>
      %20 = math.exp %19 : vector<8x8xf32>
      %c0_7 = arith.constant 0 : index
      %c0_8 = arith.constant 0 : index
      %21 = vector.load %arg9[%c0_7, %c0_8] : memref<8x8xf32, #tpu.memory_space<vmem>>, vector<8x8xf32>
      tpu.vector_store %arg9[%c0_7, %c0_8], %20 {strides = array<i32>} : memref<8x8xf32, #tpu.memory_space<vmem>>, vector<8x8xf32>,
      %22 = tpu.iota {dimensions = array<i32: 0>} : vector<8x128xi32>
      %c1_i32 = arith.constant 1 : i32
      %23 = vector.broadcast %c1_i32 : i32 to vector<8x128xi32>
      %24 = arith.cmpi eq, %22, %23 : vector<8x128xi32>
      %cst_9 = arith.constant 1.000000e+00 : f32
      %cst_10 = arith.constant 0.000000e+00 : f32
      %25 = vector.broadcast %cst_9 : f32 to vector<8x128xf32>
      %26 = vector.broadcast %cst_10 : f32 to vector<8x128xf32>
      %27 = arith.select %24, %25, %26 : vector<8x128xi1>, vector<8x128xf32>
      %c0_11 = arith.constant 0 : index
      %c0_12 = arith.constant 0 : index
      %28 = vector.load %arg7[%c0_11, %c0_12] : memref<8x128xf32, #tpu.memory_space<vmem>>, vector<8x128xf32>
      tpu.vector_store %arg7[%c0_11, %c0_12], %27 {strides = array<i32>} : memref<8x128xf32, #tpu.memory_space<vmem>>, vector<8x128xf32>,
      %cst_13 = arith.constant 0.000000e+00 : f32
      %29 = vector.broadcast %cst_13 : f32 to vector<1x128xf32>
      %c0_14 = arith.constant 0 : index
      %c0_15 = arith.constant 0 : index
      %30 = vector.load %arg8[%c0_14, %c0_15] : memref<1x128xf32, #tpu.memory_space<vmem>>, vector<1x128xf32>
      tpu.vector_store %arg8[%c0_14, %c0_15], %29 {strides = array<i32>} : memref<1x128xf32, #tpu.memory_space<vmem>>, vector<1x128xf32>,
    } else {
    }
    %4 = arith.index_cast %arg0 : i32 to index
    %5 = memref.load %arg2[%4] : memref<1xi32, #tpu.memory_space<smem>>
    %6 = arith.cmpi slt, %0, %5 : i32
    %7 = arith.extui %6 : i1 to i32
    %c0_i32_1 = arith.constant 0 : i32
    %8 = arith.cmpi ne, %7, %c0_i32_1 : i32
    scf.if %8 {
      %c0 = arith.constant 0 : index
      %c0_4 = arith.constant 0 : index
      %12 = vector.load %arg9[%c0, %c0_4] : memref<8x8xf32, #tpu.memory_space<vmem>>, vector<8x8xf32>
      %c0_5 = arith.constant 0 : index
      %c0_6 = arith.constant 0 : index
      %13 = vector.load %arg3[%c0_5, %c0_6] : memref<1x128xi32, #tpu.memory_space<vmem>>, vector<1x128xi32>
      %c0_7 = arith.constant 0 : index
      %c0_8 = arith.constant 0 : index
      %14 = memref.load %arg10[%c0_7, %c0_8] : memref<1x1xf32, #tpu.memory_space<smem>>
      %c0_9 = arith.constant 0 : index
      %c0_10 = arith.constant 0 : index
      %15 = vector.load %arg7[%c0_9, %c0_10] : memref<8x128xf32, #tpu.memory_space<vmem>>, vector<8x128xf32>
      %c0_11 = arith.constant 0 : index
      %c0_12 = arith.constant 0 : index
      %16 = vector.load %arg8[%c0_11, %c0_12] : memref<1x128xf32, #tpu.memory_space<vmem>>, vector<1x128xf32>
      %c0_13 = arith.constant 0 : index
      %c0_14 = arith.constant 0 : index
      %c0_15 = arith.constant 0 : index
      %17 = vector.load %arg4[%c0_13, %c0_14, %c0_15] : memref<12x8x128xf32, #tpu.memory_space<vmem>>, vector<1x8x128xf32>
      %18 = vector.shape_cast %17 : vector<1x8x128xf32> to vector<8x128xf32>
      %cst = arith.constant dense<0.000000e+00> : vector<8x128xf32>
      %19 = tpu.matmul %12, %15, %cst {dimension_numbers = #tpu.dot_dimension_numbers<[1], [0], [0], [1], [0, 0, 1, 1], [], []>} : vector<8x8xf32>, vector<8x128xf32>, vector<8x128xf32> -> vector<8x128xf32>
      %cst_16 = arith.constant dense<0xFF800000> : vector<128xf32>
      %20 = vector.multi_reduction <maximumf>, %18, %cst_16 [0] : vector<8x128xf32> to vector<128xf32>
      %21 = vector.shape_cast %20 : vector<128xf32> to vector<1x128xf32>
      %22 = vector.broadcast %21 : vector<1x128xf32> to vector<8x128xf32>
      %23 = arith.subf %18, %22 : vector<8x128xf32>
      %24 = math.exp %23 : vector<8x128xf32>
      %25 = arith.mulf %19, %24 : vector<8x128xf32>
      %cst_17 = arith.constant dense<0xFF800000> : vector<128xf32>
      %26 = vector.multi_reduction <maximumf>, %25, %cst_17 [0] : vector<8x128xf32> to vector<128xf32>
      %27 = vector.shape_cast %26 : vector<128xf32> to vector<1x128xf32>
      %cst_18 = arith.constant 1.000000e-30 : f32
      %28 = vector.broadcast %cst_18 : f32 to vector<1x128xf32>
      %29 = arith.maximumf %27, %28 : vector<1x128xf32>
      %30 = tpu.reciprocal %29 {approx = true} : vector<1x128xf32> -> vector<1x128xf32>
      %31 = vector.broadcast %14 : f32 to vector<1x128xf32>
      %32 = arith.addf %31, %21 : vector<1x128xf32>
      %33 = math.log %30 : vector<1x128xf32>
      %34 = arith.subf %32, %33 : vector<1x128xf32>
      %35 = arith.addf %16, %34 : vector<1x128xf32>
      %36 = vector.broadcast %30 : vector<1x128xf32> to vector<8x128xf32>
      %37 = arith.mulf %25, %36 : vector<8x128xf32>
      %c0_i32_19 = arith.constant 0 : i32
      %38 = arith.addi %0, %c0_i32_19 : i32
      %39 = vector.broadcast %38 : i32 to vector<1x128xi32>
      %40 = arith.cmpi sgt, %13, %39 : vector<1x128xi32>
      %41 = vector.shape_cast %40 : vector<1x128xi1> to vector<1x128xi1>
      %42 = vector.broadcast %41 : vector<1x128xi1> to vector<8x128xi1>
      %43 = arith.select %42, %37, %15 : vector<8x128xi1>, vector<8x128xf32>
      %44 = arith.select %40, %35, %16 : vector<1x128xi1>, vector<1x128xf32>
      %c1 = arith.constant 1 : index
      %c0_20 = arith.constant 0 : index
      %c0_21 = arith.constant 0 : index
      %45 = vector.load %arg4[%c1, %c0_20, %c0_21] : memref<12x8x128xf32, #tpu.memory_space<vmem>>, vector<1x8x128xf32>
      %46 = vector.shape_cast %45 : vector<1x8x128xf32> to vector<8x128xf32>
      %cst_22 = arith.constant dense<0.000000e+00> : vector<8x128xf32>
      %47 = tpu.matmul %12, %43, %cst_22 {dimension_numbers = #tpu.dot_dimension_numbers<[1], [0], [0], [1], [0, 0, 1, 1], [], []>} : vector<8x8xf32>, vector<8x128xf32>, vector<8x128xf32> -> vector<8x128xf32>
      %cst_23 = arith.constant dense<0xFF800000> : vector<128xf32>
      %48 = vector.multi_reduction <maximumf>, %46, %cst_23 [0] : vector<8x128xf32> to vector<128xf32>
      %49 = vector.shape_cast %48 : vector<128xf32> to vector<1x128xf32>
      %50 = vector.broadcast %49 : vector<1x128xf32> to vector<8x128xf32>
      %51 = arith.subf %46, %50 : vector<8x128xf32>
      %52 = math.exp %51 : vector<8x128xf32>
      %53 = arith.mulf %47, %52 : vector<8x128xf32>
      %cst_24 = arith.constant dense<0xFF800000> : vector<128xf32>
      %54 = vector.multi_reduction <maximumf>, %53, %cst_24 [0] : vector<8x128xf32> to vector<128xf32>
      %55 = vector.shape_cast %54 : vector<128xf32> to vector<1x128xf32>
      %cst_25 = arith.constant 1.000000e-30 : f32
      %56 = vector.broadcast %cst_25 : f32 to vector<1x128xf32>
      %57 = arith.maximumf %55, %56 : vector<1x128xf32>
      %58 = tpu.reciprocal %57 {approx = true} : vector<1x128xf32> -> vector<1x128xf32>
      %59 = vector.broadcast %14 : f32 to vector<1x128xf32>
      %60 = arith.addf %59, %49 : vector<1x128xf32>
      %61 = math.log %58 : vector<1x128xf32>
      %62 = arith.subf %60, %61 : vector<1x128xf32>
      %63 = arith.addf %44, %62 : vector<1x128xf32>
      %64 = vector.broadcast %58 : vector<1x128xf32> to vector<8x128xf32>
      %65 = arith.mulf %53, %64 : vector<8x128xf32>
      %c1_i32 = arith.constant 1 : i32
      %66 = arith.addi %0, %c1_i32 : i32
      %67 = vector.broadcast %66 : i32 to vector<1x128xi32>
      %68 = arith.cmpi sgt, %13, %67 : vector<1x128xi32>
      %69 = vector.shape_cast %68 : vector<1x128xi1> to vector<1x128xi1>
      %70 = vector.broadcast %69 : vector<1x128xi1> to vector<8x128xi1>
      %71 = arith.select %70, %65, %43 : vector<8x128xi1>, vector<8x128xf32>
      %72 = arith.select %68, %63, %44 : vector<1x128xi1>, vector<1x128xf32>
      %c2 = arith.constant 2 : index
      %c0_26 = arith.constant 0 : index
      %c0_27 = arith.constant 0 : index
      %73 = vector.load %arg4[%c2, %c0_26, %c0_27] : memref<12x8x128xf32, #tpu.memory_space<vmem>>, vector<1x8x128xf32>
      %74 = vector.shape_cast %73 : vector<1x8x128xf32> to vector<8x128xf32>
      %cst_28 = arith.constant dense<0.000000e+00> : vector<8x128xf32>
      %75 = tpu.matmul %12, %71, %cst_28 {dimension_numbers = #tpu.dot_dimension_numbers<[1], [0], [0], [1], [0, 0, 1, 1], [], []>} : vector<8x8xf32>, vector<8x128xf32>, vector<8x128xf32> -> vector<8x128xf32>
      %cst_29 = arith.constant dense<0xFF800000> : vector<128xf32>
      %76 = vector.multi_reduction <maximumf>, %74, %cst_29 [0] : vector<8x128xf32> to vector<128xf32>
      %77 = vector.shape_cast %76 : vector<128xf32> to vector<1x128xf32>
      %78 = vector.broadcast %77 : vector<1x128xf32> to vector<8x128xf32>
      %79 = arith.subf %74, %78 : vector<8x128xf32>
      %80 = math.exp %79 : vector<8x128xf32>
      %81 = arith.mulf %75, %80 : vector<8x128xf32>
      %cst_30 = arith.constant dense<0xFF800000> : vector<128xf32>
      %82 = vector.multi_reduction <maximumf>, %81, %cst_30 [0] : vector<8x128xf32> to vector<128xf32>
      %83 = vector.shape_cast %82 : vector<128xf32> to vector<1x128xf32>
      %cst_31 = arith.constant 1.000000e-30 : f32
      %84 = vector.broadcast %cst_31 : f32 to vector<1x128xf32>
      %85 = arith.maximumf %83, %84 : vector<1x128xf32>
      %86 = tpu.reciprocal %85 {approx = true} : vector<1x128xf32> -> vector<1x128xf32>
      %87 = vector.broadcast %14 : f32 to vector<1x128xf32>
      %88 = arith.addf %87, %77 : vector<1x128xf32>
      %89 = math.log %86 : vector<1x128xf32>
      %90 = arith.subf %88, %89 : vector<1x128xf32>
      %91 = arith.addf %72, %90 : vector<1x128xf32>
      %92 = vector.broadcast %86 : vector<1x128xf32> to vector<8x128xf32>
      %93 = arith.mulf %81, %92 : vector<8x128xf32>
      %c2_i32 = arith.constant 2 : i32
      %94 = arith.addi %0, %c2_i32 : i32
      %95 = vector.broadcast %94 : i32 to vector<1x128xi32>
      %96 = arith.cmpi sgt, %13, %95 : vector<1x128xi32>
      %97 = vector.shape_cast %96 : vector<1x128xi1> to vector<1x128xi1>
      %98 = vector.broadcast %97 : vector<1x128xi1> to vector<8x128xi1>
      %99 = arith.select %98, %93, %71 : vector<8x128xi1>, vector<8x128xf32>
      %100 = arith.select %96, %91, %72 : vector<1x128xi1>, vector<1x128xf32>
      %c3 = arith.constant 3 : index
      %c0_32 = arith.constant 0 : index
      %c0_33 = arith.constant 0 : index
      %101 = vector.load %arg4[%c3, %c0_32, %c0_33] : memref<12x8x128xf32, #tpu.memory_space<vmem>>, vector<1x8x128xf32>
      %102 = vector.shape_cast %101 : vector<1x8x128xf32> to vector<8x128xf32>
      %cst_34 = arith.constant dense<0.000000e+00> : vector<8x128xf32>
      %103 = tpu.matmul %12, %99, %cst_34 {dimension_numbers = #tpu.dot_dimension_numbers<[1], [0], [0], [1], [0, 0, 1, 1], [], []>} : vector<8x8xf32>, vector<8x128xf32>, vector<8x128xf32> -> vector<8x128xf32>
      %cst_35 = arith.constant dense<0xFF800000> : vector<128xf32>
      %104 = vector.multi_reduction <maximumf>, %102, %cst_35 [0] : vector<8x128xf32> to vector<128xf32>
      %105 = vector.shape_cast %104 : vector<128xf32> to vector<1x128xf32>
      %106 = vector.broadcast %105 : vector<1x128xf32> to vector<8x128xf32>
      %107 = arith.subf %102, %106 : vector<8x128xf32>
      %108 = math.exp %107 : vector<8x128xf32>
      %109 = arith.mulf %103, %108 : vector<8x128xf32>
      %cst_36 = arith.constant dense<0xFF800000> : vector<128xf32>
      %110 = vector.multi_reduction <maximumf>, %109, %cst_36 [0] : vector<8x128xf32> to vector<128xf32>
      %111 = vector.shape_cast %110 : vector<128xf32> to vector<1x128xf32>
      %cst_37 = arith.constant 1.000000e-30 : f32
      %112 = vector.broadcast %cst_37 : f32 to vector<1x128xf32>
      %113 = arith.maximumf %111, %112 : vector<1x128xf32>
      %114 = tpu.reciprocal %113 {approx = true} : vector<1x128xf32> -> vector<1x128xf32>
      %115 = vector.broadcast %14 : f32 to vector<1x128xf32>
      %116 = arith.addf %115, %105 : vector<1x128xf32>
      %117 = math.log %114 : vector<1x128xf32>
      %118 = arith.subf %116, %117 : vector<1x128xf32>
      %119 = arith.addf %100, %118 : vector<1x128xf32>
      %120 = vector.broadcast %114 : vector<1x128xf32> to vector<8x128xf32>
      %121 = arith.mulf %109, %120 : vector<8x128xf32>
      %c3_i32 = arith.constant 3 : i32
      %122 = arith.addi %0, %c3_i32 : i32
      %123 = vector.broadcast %122 : i32 to vector<1x128xi32>
      %124 = arith.cmpi sgt, %13, %123 : vector<1x128xi32>
      %125 = vector.shape_cast %124 : vector<1x128xi1> to vector<1x128xi1>
      %126 = vector.broadcast %125 : vector<1x128xi1> to vector<8x128xi1>
      %127 = arith.select %126, %121, %99 : vector<8x128xi1>, vector<8x128xf32>
      %128 = arith.select %124, %119, %100 : vector<1x128xi1>, vector<1x128xf32>
      %c4 = arith.constant 4 : index
      %c0_38 = arith.constant 0 : index
      %c0_39 = arith.constant 0 : index
      %129 = vector.load %arg4[%c4, %c0_38, %c0_39] : memref<12x8x128xf32, #tpu.memory_space<vmem>>, vector<1x8x128xf32>
      %130 = vector.shape_cast %129 : vector<1x8x128xf32> to vector<8x128xf32>
      %cst_40 = arith.constant dense<0.000000e+00> : vector<8x128xf32>
      %131 = tpu.matmul %12, %127, %cst_40 {dimension_numbers = #tpu.dot_dimension_numbers<[1], [0], [0], [1], [0, 0, 1, 1], [], []>} : vector<8x8xf32>, vector<8x128xf32>, vector<8x128xf32> -> vector<8x128xf32>
      %cst_41 = arith.constant dense<0xFF800000> : vector<128xf32>
      %132 = vector.multi_reduction <maximumf>, %130, %cst_41 [0] : vector<8x128xf32> to vector<128xf32>
      %133 = vector.shape_cast %132 : vector<128xf32> to vector<1x128xf32>
      %134 = vector.broadcast %133 : vector<1x128xf32> to vector<8x128xf32>
      %135 = arith.subf %130, %134 : vector<8x128xf32>
      %136 = math.exp %135 : vector<8x128xf32>
      %137 = arith.mulf %131, %136 : vector<8x128xf32>
      %cst_42 = arith.constant dense<0xFF800000> : vector<128xf32>
      %138 = vector.multi_reduction <maximumf>, %137, %cst_42 [0] : vector<8x128xf32> to vector<128xf32>
      %139 = vector.shape_cast %138 : vector<128xf32> to vector<1x128xf32>
      %cst_43 = arith.constant 1.000000e-30 : f32
      %140 = vector.broadcast %cst_43 : f32 to vector<1x128xf32>
      %141 = arith.maximumf %139, %140 : vector<1x128xf32>
      %142 = tpu.reciprocal %141 {approx = true} : vector<1x128xf32> -> vector<1x128xf32>
      %143 = vector.broadcast %14 : f32 to vector<1x128xf32>
      %144 = arith.addf %143, %133 : vector<1x128xf32>
      %145 = math.log %142 : vector<1x128xf32>
      %146 = arith.subf %144, %145 : vector<1x128xf32>
      %147 = arith.addf %128, %146 : vector<1x128xf32>
      %148 = vector.broadcast %142 : vector<1x128xf32> to vector<8x128xf32>
      %149 = arith.mulf %137, %148 : vector<8x128xf32>
      %c4_i32 = arith.constant 4 : i32
      %150 = arith.addi %0, %c4_i32 : i32
      %151 = vector.broadcast %150 : i32 to vector<1x128xi32>
      %152 = arith.cmpi sgt, %13, %151 : vector<1x128xi32>
      %153 = vector.shape_cast %152 : vector<1x128xi1> to vector<1x128xi1>
      %154 = vector.broadcast %153 : vector<1x128xi1> to vector<8x128xi1>
      %155 = arith.select %154, %149, %127 : vector<8x128xi1>, vector<8x128xf32>
      %156 = arith.select %152, %147, %128 : vector<1x128xi1>, vector<1x128xf32>
      %c5 = arith.constant 5 : index
      %c0_44 = arith.constant 0 : index
      %c0_45 = arith.constant 0 : index
      %157 = vector.load %arg4[%c5, %c0_44, %c0_45] : memref<12x8x128xf32, #tpu.memory_space<vmem>>, vector<1x8x128xf32>
      %158 = vector.shape_cast %157 : vector<1x8x128xf32> to vector<8x128xf32>
      %cst_46 = arith.constant dense<0.000000e+00> : vector<8x128xf32>
      %159 = tpu.matmul %12, %155, %cst_46 {dimension_numbers = #tpu.dot_dimension_numbers<[1], [0], [0], [1], [0, 0, 1, 1], [], []>} : vector<8x8xf32>, vector<8x128xf32>, vector<8x128xf32> -> vector<8x128xf32>
      %cst_47 = arith.constant dense<0xFF800000> : vector<128xf32>
      %160 = vector.multi_reduction <maximumf>, %158, %cst_47 [0] : vector<8x128xf32> to vector<128xf32>
      %161 = vector.shape_cast %160 : vector<128xf32> to vector<1x128xf32>
      %162 = vector.broadcast %161 : vector<1x128xf32> to vector<8x128xf32>
      %163 = arith.subf %158, %162 : vector<8x128xf32>
      %164 = math.exp %163 : vector<8x128xf32>
      %165 = arith.mulf %159, %164 : vector<8x128xf32>
      %cst_48 = arith.constant dense<0xFF800000> : vector<128xf32>
      %166 = vector.multi_reduction <maximumf>, %165, %cst_48 [0] : vector<8x128xf32> to vector<128xf32>
      %167 = vector.shape_cast %166 : vector<128xf32> to vector<1x128xf32>
      %cst_49 = arith.constant 1.000000e-30 : f32
      %168 = vector.broadcast %cst_49 : f32 to vector<1x128xf32>
      %169 = arith.maximumf %167, %168 : vector<1x128xf32>
      %170 = tpu.reciprocal %169 {approx = true} : vector<1x128xf32> -> vector<1x128xf32>
      %171 = vector.broadcast %14 : f32 to vector<1x128xf32>
      %172 = arith.addf %171, %161 : vector<1x128xf32>
      %173 = math.log %170 : vector<1x128xf32>
      %174 = arith.subf %172, %173 : vector<1x128xf32>
      %175 = arith.addf %156, %174 : vector<1x128xf32>
      %176 = vector.broadcast %170 : vector<1x128xf32> to vector<8x128xf32>
      %177 = arith.mulf %165, %176 : vector<8x128xf32>
      %c5_i32 = arith.constant 5 : i32
      %178 = arith.addi %0, %c5_i32 : i32
      %179 = vector.broadcast %178 : i32 to vector<1x128xi32>
      %180 = arith.cmpi sgt, %13, %179 : vector<1x128xi32>
      %181 = vector.shape_cast %180 : vector<1x128xi1> to vector<1x128xi1>
      %182 = vector.broadcast %181 : vector<1x128xi1> to vector<8x128xi1>
      %183 = arith.select %182, %177, %155 : vector<8x128xi1>, vector<8x128xf32>
      %184 = arith.select %180, %175, %156 : vector<1x128xi1>, vector<1x128xf32>
      %c6 = arith.constant 6 : index
      %c0_50 = arith.constant 0 : index
      %c0_51 = arith.constant 0 : index
      %185 = vector.load %arg4[%c6, %c0_50, %c0_51] : memref<12x8x128xf32, #tpu.memory_space<vmem>>, vector<1x8x128xf32>
      %186 = vector.shape_cast %185 : vector<1x8x128xf32> to vector<8x128xf32>
      %cst_52 = arith.constant dense<0.000000e+00> : vector<8x128xf32>
      %187 = tpu.matmul %12, %183, %cst_52 {dimension_numbers = #tpu.dot_dimension_numbers<[1], [0], [0], [1], [0, 0, 1, 1], [], []>} : vector<8x8xf32>, vector<8x128xf32>, vector<8x128xf32> -> vector<8x128xf32>
      %cst_53 = arith.constant dense<0xFF800000> : vector<128xf32>
      %188 = vector.multi_reduction <maximumf>, %186, %cst_53 [0] : vector<8x128xf32> to vector<128xf32>
      %189 = vector.shape_cast %188 : vector<128xf32> to vector<1x128xf32>
      %190 = vector.broadcast %189 : vector<1x128xf32> to vector<8x128xf32>
      %191 = arith.subf %186, %190 : vector<8x128xf32>
      %192 = math.exp %191 : vector<8x128xf32>
      %193 = arith.mulf %187, %192 : vector<8x128xf32>
      %cst_54 = arith.constant dense<0xFF800000> : vector<128xf32>
      %194 = vector.multi_reduction <maximumf>, %193, %cst_54 [0] : vector<8x128xf32> to vector<128xf32>
      %195 = vector.shape_cast %194 : vector<128xf32> to vector<1x128xf32>
      %cst_55 = arith.constant 1.000000e-30 : f32
      %196 = vector.broadcast %cst_55 : f32 to vector<1x128xf32>
      %197 = arith.maximumf %195, %196 : vector<1x128xf32>
      %198 = tpu.reciprocal %197 {approx = true} : vector<1x128xf32> -> vector<1x128xf32>
      %199 = vector.broadcast %14 : f32 to vector<1x128xf32>
      %200 = arith.addf %199, %189 : vector<1x128xf32>
      %201 = math.log %198 : vector<1x128xf32>
      %202 = arith.subf %200, %201 : vector<1x128xf32>
      %203 = arith.addf %184, %202 : vector<1x128xf32>
      %204 = vector.broadcast %198 : vector<1x128xf32> to vector<8x128xf32>
      %205 = arith.mulf %193, %204 : vector<8x128xf32>
      %c6_i32 = arith.constant 6 : i32
      %206 = arith.addi %0, %c6_i32 : i32
      %207 = vector.broadcast %206 : i32 to vector<1x128xi32>
      %208 = arith.cmpi sgt, %13, %207 : vector<1x128xi32>
      %209 = vector.shape_cast %208 : vector<1x128xi1> to vector<1x128xi1>
      %210 = vector.broadcast %209 : vector<1x128xi1> to vector<8x128xi1>
      %211 = arith.select %210, %205, %183 : vector<8x128xi1>, vector<8x128xf32>
      %212 = arith.select %208, %203, %184 : vector<1x128xi1>, vector<1x128xf32>
      %c7 = arith.constant 7 : index
      %c0_56 = arith.constant 0 : index
      %c0_57 = arith.constant 0 : index
      %213 = vector.load %arg4[%c7, %c0_56, %c0_57] : memref<12x8x128xf32, #tpu.memory_space<vmem>>, vector<1x8x128xf32>
      %214 = vector.shape_cast %213 : vector<1x8x128xf32> to vector<8x128xf32>
      %cst_58 = arith.constant dense<0.000000e+00> : vector<8x128xf32>
      %215 = tpu.matmul %12, %211, %cst_58 {dimension_numbers = #tpu.dot_dimension_numbers<[1], [0], [0], [1], [0, 0, 1, 1], [], []>} : vector<8x8xf32>, vector<8x128xf32>, vector<8x128xf32> -> vector<8x128xf32>
      %cst_59 = arith.constant dense<0xFF800000> : vector<128xf32>
      %216 = vector.multi_reduction <maximumf>, %214, %cst_59 [0] : vector<8x128xf32> to vector<128xf32>
      %217 = vector.shape_cast %216 : vector<128xf32> to vector<1x128xf32>
      %218 = vector.broadcast %217 : vector<1x128xf32> to vector<8x128xf32>
      %219 = arith.subf %214, %218 : vector<8x128xf32>
      %220 = math.exp %219 : vector<8x128xf32>
      %221 = arith.mulf %215, %220 : vector<8x128xf32>
      %cst_60 = arith.constant dense<0xFF800000> : vector<128xf32>
      %222 = vector.multi_reduction <maximumf>, %221, %cst_60 [0] : vector<8x128xf32> to vector<128xf32>
      %223 = vector.shape_cast %222 : vector<128xf32> to vector<1x128xf32>
      %cst_61 = arith.constant 1.000000e-30 : f32
      %224 = vector.broadcast %cst_61 : f32 to vector<1x128xf32>
      %225 = arith.maximumf %223, %224 : vector<1x128xf32>
      %226 = tpu.reciprocal %225 {approx = true} : vector<1x128xf32> -> vector<1x128xf32>
      %227 = vector.broadcast %14 : f32 to vector<1x128xf32>
      %228 = arith.addf %227, %217 : vector<1x128xf32>
      %229 = math.log %226 : vector<1x128xf32>
      %230 = arith.subf %228, %229 : vector<1x128xf32>
      %231 = arith.addf %212, %230 : vector<1x128xf32>
      %232 = vector.broadcast %226 : vector<1x128xf32> to vector<8x128xf32>
      %233 = arith.mulf %221, %232 : vector<8x128xf32>
      %c7_i32 = arith.constant 7 : i32
      %234 = arith.addi %0, %c7_i32 : i32
      %235 = vector.broadcast %234 : i32 to vector<1x128xi32>
      %236 = arith.cmpi sgt, %13, %235 : vector<1x128xi32>
      %237 = vector.shape_cast %236 : vector<1x128xi1> to vector<1x128xi1>
      %238 = vector.broadcast %237 : vector<1x128xi1> to vector<8x128xi1>
      %239 = arith.select %238, %233, %211 : vector<8x128xi1>, vector<8x128xf32>
      %240 = arith.select %236, %231, %212 : vector<1x128xi1>, vector<1x128xf32>
      %c8 = arith.constant 8 : index
      %c0_62 = arith.constant 0 : index
      %c0_63 = arith.constant 0 : index
      %241 = vector.load %arg4[%c8, %c0_62, %c0_63] : memref<12x8x128xf32, #tpu.memory_space<vmem>>, vector<1x8x128xf32>
      %242 = vector.shape_cast %241 : vector<1x8x128xf32> to vector<8x128xf32>
      %cst_64 = arith.constant dense<0.000000e+00> : vector<8x128xf32>
      %243 = tpu.matmul %12, %239, %cst_64 {dimension_numbers = #tpu.dot_dimension_numbers<[1], [0], [0], [1], [0, 0, 1, 1], [], []>} : vector<8x8xf32>, vector<8x128xf32>, vector<8x128xf32> -> vector<8x128xf32>
      %cst_65 = arith.constant dense<0xFF800000> : vector<128xf32>
      %244 = vector.multi_reduction <maximumf>, %242, %cst_65 [0] : vector<8x128xf32> to vector<128xf32>
      %245 = vector.shape_cast %244 : vector<128xf32> to vector<1x128xf32>
      %246 = vector.broadcast %245 : vector<1x128xf32> to vector<8x128xf32>
      %247 = arith.subf %242, %246 : vector<8x128xf32>
      %248 = math.exp %247 : vector<8x128xf32>
      %249 = arith.mulf %243, %248 : vector<8x128xf32>
      %cst_66 = arith.constant dense<0xFF800000> : vector<128xf32>
      %250 = vector.multi_reduction <maximumf>, %249, %cst_66 [0] : vector<8x128xf32> to vector<128xf32>
      %251 = vector.shape_cast %250 : vector<128xf32> to vector<1x128xf32>
      %cst_67 = arith.constant 1.000000e-30 : f32
      %252 = vector.broadcast %cst_67 : f32 to vector<1x128xf32>
      %253 = arith.maximumf %251, %252 : vector<1x128xf32>
      %254 = tpu.reciprocal %253 {approx = true} : vector<1x128xf32> -> vector<1x128xf32>
      %255 = vector.broadcast %14 : f32 to vector<1x128xf32>
      %256 = arith.addf %255, %245 : vector<1x128xf32>
      %257 = math.log %254 : vector<1x128xf32>
      %258 = arith.subf %256, %257 : vector<1x128xf32>
      %259 = arith.addf %240, %258 : vector<1x128xf32>
      %260 = vector.broadcast %254 : vector<1x128xf32> to vector<8x128xf32>
      %261 = arith.mulf %249, %260 : vector<8x128xf32>
      %c8_i32 = arith.constant 8 : i32
      %262 = arith.addi %0, %c8_i32 : i32
      %263 = vector.broadcast %262 : i32 to vector<1x128xi32>
      %264 = arith.cmpi sgt, %13, %263 : vector<1x128xi32>
      %265 = vector.shape_cast %264 : vector<1x128xi1> to vector<1x128xi1>
      %266 = vector.broadcast %265 : vector<1x128xi1> to vector<8x128xi1>
      %267 = arith.select %266, %261, %239 : vector<8x128xi1>, vector<8x128xf32>
      %268 = arith.select %264, %259, %240 : vector<1x128xi1>, vector<1x128xf32>
      %c9 = arith.constant 9 : index
      %c0_68 = arith.constant 0 : index
      %c0_69 = arith.constant 0 : index
      %269 = vector.load %arg4[%c9, %c0_68, %c0_69] : memref<12x8x128xf32, #tpu.memory_space<vmem>>, vector<1x8x128xf32>
      %270 = vector.shape_cast %269 : vector<1x8x128xf32> to vector<8x128xf32>
      %cst_70 = arith.constant dense<0.000000e+00> : vector<8x128xf32>
      %271 = tpu.matmul %12, %267, %cst_70 {dimension_numbers = #tpu.dot_dimension_numbers<[1], [0], [0], [1], [0, 0, 1, 1], [], []>} : vector<8x8xf32>, vector<8x128xf32>, vector<8x128xf32> -> vector<8x128xf32>
      %cst_71 = arith.constant dense<0xFF800000> : vector<128xf32>
      %272 = vector.multi_reduction <maximumf>, %270, %cst_71 [0] : vector<8x128xf32> to vector<128xf32>
      %273 = vector.shape_cast %272 : vector<128xf32> to vector<1x128xf32>
      %274 = vector.broadcast %273 : vector<1x128xf32> to vector<8x128xf32>
      %275 = arith.subf %270, %274 : vector<8x128xf32>
      %276 = math.exp %275 : vector<8x128xf32>
      %277 = arith.mulf %271, %276 : vector<8x128xf32>
      %cst_72 = arith.constant dense<0xFF800000> : vector<128xf32>
      %278 = vector.multi_reduction <maximumf>, %277, %cst_72 [0] : vector<8x128xf32> to vector<128xf32>
      %279 = vector.shape_cast %278 : vector<128xf32> to vector<1x128xf32>
      %cst_73 = arith.constant 1.000000e-30 : f32
      %280 = vector.broadcast %cst_73 : f32 to vector<1x128xf32>
      %281 = arith.maximumf %279, %280 : vector<1x128xf32>
      %282 = tpu.reciprocal %281 {approx = true} : vector<1x128xf32> -> vector<1x128xf32>
      %283 = vector.broadcast %14 : f32 to vector<1x128xf32>
      %284 = arith.addf %283, %273 : vector<1x128xf32>
      %285 = math.log %282 : vector<1x128xf32>
      %286 = arith.subf %284, %285 : vector<1x128xf32>
      %287 = arith.addf %268, %286 : vector<1x128xf32>
      %288 = vector.broadcast %282 : vector<1x128xf32> to vector<8x128xf32>
      %289 = arith.mulf %277, %288 : vector<8x128xf32>
      %c9_i32 = arith.constant 9 : i32
      %290 = arith.addi %0, %c9_i32 : i32
      %291 = vector.broadcast %290 : i32 to vector<1x128xi32>
      %292 = arith.cmpi sgt, %13, %291 : vector<1x128xi32>
      %293 = vector.shape_cast %292 : vector<1x128xi1> to vector<1x128xi1>
      %294 = vector.broadcast %293 : vector<1x128xi1> to vector<8x128xi1>
      %295 = arith.select %294, %289, %267 : vector<8x128xi1>, vector<8x128xf32>
      %296 = arith.select %292, %287, %268 : vector<1x128xi1>, vector<1x128xf32>
      %c10 = arith.constant 10 : index
      %c0_74 = arith.constant 0 : index
      %c0_75 = arith.constant 0 : index
      %297 = vector.load %arg4[%c10, %c0_74, %c0_75] : memref<12x8x128xf32, #tpu.memory_space<vmem>>, vector<1x8x128xf32>
      %298 = vector.shape_cast %297 : vector<1x8x128xf32> to vector<8x128xf32>
      %cst_76 = arith.constant dense<0.000000e+00> : vector<8x128xf32>
      %299 = tpu.matmul %12, %295, %cst_76 {dimension_numbers = #tpu.dot_dimension_numbers<[1], [0], [0], [1], [0, 0, 1, 1], [], []>} : vector<8x8xf32>, vector<8x128xf32>, vector<8x128xf32> -> vector<8x128xf32>
      %cst_77 = arith.constant dense<0xFF800000> : vector<128xf32>
      %300 = vector.multi_reduction <maximumf>, %298, %cst_77 [0] : vector<8x128xf32> to vector<128xf32>
      %301 = vector.shape_cast %300 : vector<128xf32> to vector<1x128xf32>
      %302 = vector.broadcast %301 : vector<1x128xf32> to vector<8x128xf32>
      %303 = arith.subf %298, %302 : vector<8x128xf32>
      %304 = math.exp %303 : vector<8x128xf32>
      %305 = arith.mulf %299, %304 : vector<8x128xf32>
      %cst_78 = arith.constant dense<0xFF800000> : vector<128xf32>
      %306 = vector.multi_reduction <maximumf>, %305, %cst_78 [0] : vector<8x128xf32> to vector<128xf32>
      %307 = vector.shape_cast %306 : vector<128xf32> to vector<1x128xf32>
      %cst_79 = arith.constant 1.000000e-30 : f32
      %308 = vector.broadcast %cst_79 : f32 to vector<1x128xf32>
      %309 = arith.maximumf %307, %308 : vector<1x128xf32>
      %310 = tpu.reciprocal %309 {approx = true} : vector<1x128xf32> -> vector<1x128xf32>
      %311 = vector.broadcast %14 : f32 to vector<1x128xf32>
      %312 = arith.addf %311, %301 : vector<1x128xf32>
      %313 = math.log %310 : vector<1x128xf32>
      %314 = arith.subf %312, %313 : vector<1x128xf32>
      %315 = arith.addf %296, %314 : vector<1x128xf32>
      %316 = vector.broadcast %310 : vector<1x128xf32> to vector<8x128xf32>
      %317 = arith.mulf %305, %316 : vector<8x128xf32>
      %c10_i32 = arith.constant 10 : i32
      %318 = arith.addi %0, %c10_i32 : i32
      %319 = vector.broadcast %318 : i32 to vector<1x128xi32>
      %320 = arith.cmpi sgt, %13, %319 : vector<1x128xi32>
      %321 = vector.shape_cast %320 : vector<1x128xi1> to vector<1x128xi1>
      %322 = vector.broadcast %321 : vector<1x128xi1> to vector<8x128xi1>
      %323 = arith.select %322, %317, %295 : vector<8x128xi1>, vector<8x128xf32>
      %324 = arith.select %320, %315, %296 : vector<1x128xi1>, vector<1x128xf32>
      %c11 = arith.constant 11 : index
      %c0_80 = arith.constant 0 : index
      %c0_81 = arith.constant 0 : index
      %325 = vector.load %arg4[%c11, %c0_80, %c0_81] : memref<12x8x128xf32, #tpu.memory_space<vmem>>, vector<1x8x128xf32>
      %326 = vector.shape_cast %325 : vector<1x8x128xf32> to vector<8x128xf32>
      %cst_82 = arith.constant dense<0.000000e+00> : vector<8x128xf32>
      %327 = tpu.matmul %12, %323, %cst_82 {dimension_numbers = #tpu.dot_dimension_numbers<[1], [0], [0], [1], [0, 0, 1, 1], [], []>} : vector<8x8xf32>, vector<8x128xf32>, vector<8x128xf32> -> vector<8x128xf32>
      %cst_83 = arith.constant dense<0xFF800000> : vector<128xf32>
      %328 = vector.multi_reduction <maximumf>, %326, %cst_83 [0] : vector<8x128xf32> to vector<128xf32>
      %329 = vector.shape_cast %328 : vector<128xf32> to vector<1x128xf32>
      %330 = vector.broadcast %329 : vector<1x128xf32> to vector<8x128xf32>
      %331 = arith.subf %326, %330 : vector<8x128xf32>
      %332 = math.exp %331 : vector<8x128xf32>
      %333 = arith.mulf %327, %332 : vector<8x128xf32>
      %cst_84 = arith.constant dense<0xFF800000> : vector<128xf32>
      %334 = vector.multi_reduction <maximumf>, %333, %cst_84 [0] : vector<8x128xf32> to vector<128xf32>
      %335 = vector.shape_cast %334 : vector<128xf32> to vector<1x128xf32>
      %cst_85 = arith.constant 1.000000e-30 : f32
      %336 = vector.broadcast %cst_85 : f32 to vector<1x128xf32>
      %337 = arith.maximumf %335, %336 : vector<1x128xf32>
      %338 = tpu.reciprocal %337 {approx = true} : vector<1x128xf32> -> vector<1x128xf32>
      %339 = vector.broadcast %14 : f32 to vector<1x128xf32>
      %340 = arith.addf %339, %329 : vector<1x128xf32>
      %341 = math.log %338 : vector<1x128xf32>
      %342 = arith.subf %340, %341 : vector<1x128xf32>
      %343 = arith.addf %324, %342 : vector<1x128xf32>
      %344 = vector.broadcast %338 : vector<1x128xf32> to vector<8x128xf32>
      %345 = arith.mulf %333, %344 : vector<8x128xf32>
      %c11_i32 = arith.constant 11 : i32
      %346 = arith.addi %0, %c11_i32 : i32
      %347 = vector.broadcast %346 : i32 to vector<1x128xi32>
      %348 = arith.cmpi sgt, %13, %347 : vector<1x128xi32>
      %349 = vector.shape_cast %348 : vector<1x128xi1> to vector<1x128xi1>
      %350 = vector.broadcast %349 : vector<1x128xi1> to vector<8x128xi1>
      %351 = arith.select %350, %345, %323 : vector<8x128xi1>, vector<8x128xf32>
      %352 = arith.select %348, %343, %324 : vector<1x128xi1>, vector<1x128xf32>
      %c0_86 = arith.constant 0 : index
      %c0_87 = arith.constant 0 : index
      %353 = vector.load %arg7[%c0_86, %c0_87] : memref<8x128xf32, #tpu.memory_space<vmem>>, vector<8x128xf32>
      tpu.vector_store %arg7[%c0_86, %c0_87], %351 {strides = array<i32>} : memref<8x128xf32, #tpu.memory_space<vmem>>, vector<8x128xf32>,
      %c0_88 = arith.constant 0 : index
      %c0_89 = arith.constant 0 : index
      %354 = vector.load %arg8[%c0_88, %c0_89] : memref<1x128xf32, #tpu.memory_space<vmem>>, vector<1x128xf32>
      tpu.vector_store %arg8[%c0_88, %c0_89], %352 {strides = array<i32>} : memref<1x128xf32, #tpu.memory_space<vmem>>, vector<1x128xf32>,
    } else {
    }
    %c0_i32_2 = arith.constant 0 : i32
    %9 = arith.cmpi eq, %arg1, %c0_i32_2 : i32
    %10 = arith.extui %9 : i1 to i32
    %c0_i32_3 = arith.constant 0 : i32
    %11 = arith.cmpi ne, %10, %c0_i32_3 : i32
    scf.if %11 {
      %c0 = arith.constant 0 : index
      %c0_4 = arith.constant 0 : index
      %12 = vector.load %arg7[%c0, %c0_4] : memref<8x128xf32, #tpu.memory_space<vmem>>, vector<8x128xf32>
      %cst = arith.constant dense<0.000000e+00> : vector<128xf32>
      %13 = vector.multi_reduction <add>, %12, %cst [0] : vector<8x128xf32> to vector<128xf32>
      %14 = vector.shape_cast %13 : vector<128xf32> to vector<1x128xf32>
      %c0_5 = arith.constant 0 : index
      %c0_6 = arith.constant 0 : index
      %15 = vector.load %arg8[%c0_5, %c0_6] : memref<1x128xf32, #tpu.memory_space<vmem>>, vector<1x128xf32>
      %cst_7 = arith.constant 1.000000e-30 : f32
      %16 = vector.broadcast %cst_7 : f32 to vector<1x128xf32>
      %17 = arith.maximumf %14, %16 : vector<1x128xf32>
      %18 = math.log %17 : vector<1x128xf32>
      %19 = arith.addf %15, %18 : vector<1x128xf32>
      %c0_8 = arith.constant 0 : index
      %c0_9 = arith.constant 0 : index
      %20 = vector.load %arg6[%c0_8, %c0_9] : memref<1x128xf32, #tpu.memory_space<vmem>>, vector<1x128xf32>
      tpu.vector_store %arg6[%c0_8, %c0_9], %19 {strides = array<i32>} : memref<1x128xf32, #tpu.memory_space<vmem>>, vector<1x128xf32>,
    } else {
    }
    return
  }
  func.func @transform_0(%arg0: i32, %arg1: i32, %arg2: memref<1xi32, #tpu.memory_space<smem>>) -> (i32, i32) {
    %c0_i32 = arith.constant 0 : i32
    %c0_i32_0 = arith.constant 0 : i32
    return %c0_i32, %arg0 : i32, i32
  }
  func.func @transform_1(%arg0: i32, %arg1: i32, %arg2: memref<1xi32, #tpu.memory_space<smem>>) -> (i32, i32, i32) {
    %c0_i32 = arith.constant 0 : i32
    %c0_i32_0 = arith.constant 0 : i32
    return %arg1, %c0_i32, %arg0 : i32, i32, i32
  }
  func.func @transform_2(%arg0: i32, %arg1: i32, %arg2: memref<1xi32, #tpu.memory_space<smem>>) -> (i32, i32) {
    %c0_i32 = arith.constant 0 : i32
    %c0_i32_0 = arith.constant 0 : i32
    %c0_i32_1 = arith.constant 0 : i32
    return %c0_i32, %c0_i32_0 : i32, i32
  }
  func.func @transform_3(%arg0: i32, %arg1: i32, %arg2: memref<1xi32, #tpu.memory_space<smem>>) -> (i32, i32) {
    %c0_i32 = arith.constant 0 : i32
    %c0_i32_0 = arith.constant 0 : i32
    return %c0_i32, %arg0 : i32, i32
  }
}

</mosaic_0001>

<bundles_post_ra>
// kernel: tpu_custom_call.1
= control target key start
LH: loop header
LB: loop body
LE: loop exit
PB: predicated region body
PF: predicated region fallthrough
CT: control target
= control target key end

     0   :  { %10 = vsyncpa [#allocation9], 0  ;;  %s1858_s0 = inlined_call_operand.<no memory space> [shape: s32[1], index: 0, kind: input, shape index: {}]   ;;  %s1859_s1 = inlined_call_operand.vmem [shape: s32[1,128], index: 1, kind: input, shape index: {}]   ;;  %s1860_s2 = inlined_call_operand.hbm [shape: f32[12,8,128], index: 2, kind: input, shape index: {}]   ;;  %s1861_s3 = inlined_call_operand.hbm [shape: f32[8,8], index: 3, kind: input, shape index: {}]   ;;  %s1862_s4 = inlined_call_operand.hbm [shape: f32[1,128], index: 4, kind: output, shape index: {}]  }
   0x1   :  { %11 = vsyncpa [#allocation12], 0 }
   0x2   :  { %12 = vsyncpa [#allocation10], 0  ;;  %s1655_s15 = smov [#allocation8]  }
   0x3   :  { %s20_s16 = sshll.u32 %s1655_s15, 4  ;;  %s21_s16 = int_to_ptr.vmem [resolvable:$true] %s20_s16 }
   0x4   :  { %s1597_s17 = scalar_lea.vmem %s21_s16, 1536  ;;  %p1602_p1 = scmp.lt.s32.totalorder %s21_s16, %s21_s16 }
   0x5   :  { %p1598_p0 = scmp.ne.s32.totalorder %s21_s16, %s1597_s17  ;;  %p1603_p2 = scmp.lt.s32.totalorder %s1597_s17, %s1597_s17 }
   0x7   :  { %p1604_p3 = por %p1603_p2, %p1602_p1 }
   0x9   :  { %p1605_p4 = pnand %p1604_p3, %p1598_p0 }
   0xb   :  { %1608 = shalt.err (!%p1605_p4)
}
   0xc   :  { %s1656_s18 = smov 128   ;;  %s1657_s19 = smov 8  }
   0xd   :  { %26 = dma.hbm_to_vmem [thread:$0]  %s1860_s2, 1536, %s21_s16, [#allocation9], %s1656_s18, %s1656_s18, %s1657_s19  }
   0xe   :  { %s1658_s22 = smov [#allocation11]  }
   0xf   :  { %s33_s23 = sshll.u32 %s1658_s22, 4  ;;  %s34_s23 = int_to_ptr.vmem [resolvable:$true] %s33_s23 }
  0x10   :  { %s1617_s24 = scalar_lea.vmem %s34_s23, 128  ;;  %p1622_p6 = scmp.lt.s32.totalorder %s34_s23, %s34_s23 }
  0x11   :  { %p1618_p5 = scmp.ne.s32.totalorder %s34_s23, %s1617_s24  ;;  %p1623_p7 = scmp.lt.s32.totalorder %s1617_s24, %s1617_s24 }
  0x13   :  { %p1624_p8 = por %p1623_p7, %p1622_p6 }
  0x15   :  { %p1625_p9 = pnand %p1624_p8, %p1618_p5 }
  0x17   :  { %1628 = shalt.err (!%p1625_p9)
}
  0x18   :  { %36 = dma.hbm_to_vmem [thread:$0]  %s1861_s3, 128, %s34_s23, [#allocation12]  }
  0x19   :  { %1649 = dma.done.wait [#allocation9], 1536  }
  0x1a   :  { %1650 = vsyncadd [#allocation9], 4294965760 }
  0x1b   :  { %1651 = dma.done.wait [#allocation12], 128  }
  0x1c   :  { %1652 = vsyncadd [#allocation12], 4294967168  ;;  %v67_v0 = vlaneseq  ;;  %v1659_v1 = vmov 0.0   ;;  %vm49_vm1 = vcmask 64512   ;;  %v48_v4 = vld [vmem:[#allocation11] sm:$0xff]  ;;  %p1405_p10 = scmp.le.s32.totalorder %s1858_s0, 0 }
  0x1d   :  { %72 = vst [vmem:[#allocation3] sm:$0x1] %v1659_v1  ;;  %v50_v5 = vsel %vm49_vm1, %v48_v4, -inf }
  0x1e   :  { %v68_v2 = vshrl.u32 %v67_v0, 7  ;;  %51 = vmax.xlane.f32.xlu0 %v50_v5 }
  0x20   :  { %vm69_vm0 = vcmp.eq.s32.totalorder %v68_v2, 1 }
  0x21   :  { %v70_v3 = vsel %vm69_vm0, 1.0, %v1659_v1 }
  0x22   :  { %71 = vst [vmem:[#allocation2] sm:$0xff] %v70_v3 }
  0xa7   :  { %v52_v6 = vpop.xlane.xlu0 %51 }
  0xa8   :  { %v53_v7 = vrot.slane %v52_v6, 4 }
  0xaa   :  { %v54_v8 = vmax.f32 %v52_v6, %v53_v7 }
  0xac   :  { %v55_v9 = vrot.slane %v54_v8, 2 }
  0xae   :  { %v56_v10 = vmax.f32 %v54_v8, %v55_v9 }
  0xb0   :  { %v57_v11 = vrot.slane %v56_v10, 1 }
  0xb2   :  { %v58_v12 = vmax.f32 %v56_v10, %v57_v11 }
  0xb4   :  { %1502 = vpush %v58_v12 }
  0xe5   :  { %s1503_s2 = spop %1502 }
  0xe6   :  { %61 = sst [smem:[#allocation5]] %s1503_s2  ;;  %v62_v13 = vstv %s1503_s2 }
  0xe7   :  { %v63_v14 = vsub.f32 %v48_v4, %v62_v13  ;;  %s80_s29 = sld [smem:[#allocation5]] (!%p1405_p10) }
  0xe9   :  { %v64_v15 = vmul.f32 1.442695, %v63_v14 }
  0xeb   :  { %1513 = vpow2.f32 %v64_v15 }
  0xf5   :  { %77 = sbr.rel (%p1405_p10) target bundleno = 2999 (0xbb7), region = 29 }
  0xf8   :  { %v1514_v16 = vpop.eup %1513 }
  0xf9   :  { %66 = vst.msk [vmem:[#allocation4] sm:$0xff] %vm49_vm1, %v1514_v16 }
  0xfa   :  { %v81_v17 = vld [vmem:[#allocation2] sm:$0xff]  ;;  %v1660_v19 = vmov 0.0   ;;  %vm1661_vm2 = vmmov 0   ;;  %v83_v20 = vld [vmem:[#allocation8] sm:$0xff]  ;;  %v1719_v41 = vsub.s32 0, %v68_v2  ;;  %v1662_v42 = vmov 0  }
  0xfb   :  { %1442 = vmatprep.subr.mxu0 %v1660_v19  ;;  %1444 = vmatprep.mubr.msk.f32.mxu0 %vm1661_vm2, %v1660_v19  ;;  %v158_v21 = vrot.slane %v83_v20, 4  ;;  %v1716_v40 = vld [vmem:[%s1859_s1] sm:$0x1]  ;;  %v1730_v48 = vstv %s80_s29  ;;  %v82_v14 = vld [vmem:[#allocation3] sm:$0x1] }
  0xfc   :  { %1443 = vmatpush3.msra.mxu0 %v81_v17  ;;  %1447 = vmatprep.subr.mxu1 %v1660_v19  ;;  %vm184_vm3 = vcmp.gt.s32.totalorder %v1716_v40, 0  ;;  %v194_v53 = vld [vmem:[#allocation8 + $0x8] sm:$0xff]  ;;  %vm291_vm5 = vcmp.gt.s32.totalorder %v1716_v40, 1  ;;  %vm398_vm7 = vcmp.gt.s32.totalorder %v1716_v40, 2  ;;  %vm505_vm9 = vcmp.gt.s32.totalorder %v1716_v40, 3 }
  0xfd   :  { %1449 = vmatprep.mubr.msk.f32.mxu1 %vm1661_vm2, %v1660_v19  ;;  %1452 = vmatprep.subr.mxu0 %v1660_v19  ;;  %v159_v22 = vmax.f32 %v83_v20, %v158_v21  ;;  %v185_v43 = vsel %vm184_vm3, 1, %v1662_v42  ;;  %v265_v54 = vrot.slane %v194_v53, 4  ;;  %v292_v9 = vsel %vm291_vm5, 1, %v1662_v42 }
  0xfe   :  { %v189_v44 = vrot.slane %v185_v43, %v1719_v41  ;;  %v296_v10 = vrot.slane %v292_v9, %v1719_v41  ;;  %vm612_vm11 = vcmp.gt.s32.totalorder %v1716_v40, 4  ;;  %vm719_vm13 = vcmp.gt.s32.totalorder %v1716_v40, 5 }
  0xff   :  { %v160_v23 = vrot.slane %v159_v22, 2  ;;  %v266_v55 = vmax.f32 %v194_v53, %v265_v54  ;;  %vm826_vm15 = vcmp.gt.s32.totalorder %v1716_v40, 6 }
 0x100   :  { %v1700_v18 = vld [vmem:[#allocation4] sm:$0xff]  ;;  %vm190_vm4 = vcmp.eq.s32.totalorder %v189_v44, 1  ;;  %vm297_vm6 = vcmp.eq.s32.totalorder %v296_v10, 1 }
 0x101   :  { %1445 = vmatmul.mubr.msk.f32.vlgmr.msra.gmra.mxu0 %vm49_vm1, %v1700_v18  ;;  %v161_v24 = vmax.f32 %v159_v22, %v160_v23  ;;  %v267_v56 = vrot.slane %v266_v55, 2 }
 0x102   :  { %1454 = vmatprep.mubr.msk.f32.mxu0 %vm1661_vm2, %v1660_v19 }
 0x103   :  { %v162_v25 = vrot.slane %v161_v24, 1  ;;  %v268_v57 = vmax.f32 %v266_v55, %v267_v56 }
 0x105   :  { %v163_v26 = vmax.f32 %v161_v24, %v162_v25  ;;  %v269_v58 = vrot.slane %v268_v57, 1  ;;  %v301_v25 = vld [vmem:[#allocation8 + $0x10] sm:$0xff] }
 0x107   :  { %v164_v27 = vsub.f32 %v83_v20, %v163_v26  ;;  %v177_v49 = vadd.f32 %v1730_v48, %v163_v26  ;;  %v270_v59 = vmax.f32 %v268_v57, %v269_v58  ;;  %v372_v26 = vrot.slane %v301_v25, 4 }
 0x109   :  { %v165_v28 = vmul.f32 1.442695, %v164_v27  ;;  %v271_v60 = vsub.f32 %v194_v53, %v270_v59  ;;  %v283_v15 = vadd.f32 %v270_v59, %v1730_v48  ;;  %v373_v27 = vmax.f32 %v301_v25, %v372_v26 }
 0x10b   :  { %1515 = vpow2.f32 %v165_v28  ;;  %v272_v61 = vmul.f32 1.442695, %v271_v60  ;;  %v374_v28 = vrot.slane %v373_v27, 2  ;;  %v408_v60 = vld [vmem:[#allocation8 + $0x18] sm:$0xff] }
 0x118   :  { %v1516_v29 = vpop.eup %1515 }
 0x1c1   :  { %v154_v30 = vpop.f32.mrf.mxu0 }
 0x1c2   :  { %v167_v31 = vmul.f32 %v1516_v29, %v154_v30  ;;  %v375_v29 = vmax.f32 %v373_v27, %v374_v28 }
 0x1c3   :  { %v1446_v32 = vpop.f32.mrf.mxu0 }
 0x1c4   :  { %v168_v33 = vrot.slane %v167_v31, 4  ;;  %v376_v30 = vrot.slane %v375_v29, 1 }
 0x1c6   :  { %v169_v34 = vmax.f32 %v167_v31, %v168_v33 }
 0x1c8   :  { %v170_v35 = vrot.slane %v169_v34, 2 }
 0x1ca   :  { %v171_v36 = vmax.f32 %v169_v34, %v170_v35 }
 0x1cc   :  { %v172_v37 = vrot.slane %v171_v36, 1 }
 0x1ce   :  { %v173_v38 = vmax.f32 %v171_v36, %v172_v37 }
 0x1d0   :  { %v174_v39 = vmax.f32 %v173_v38, 1e-30 }
 0x1d2   :  { %1517 = vrcp.f32 %v174_v39 }
 0x1df   :  { %v1518_v45 = vpop.eup %1517 }
 0x1e0   :  { %1519 = vlog2.f32 %v1518_v45  ;;  %v182_v46 = vmul.f32 %v1518_v45, %v167_v31  ;;  %v377_v31 = vmax.f32 %v375_v29, %v376_v30  ;;  %v515_v29 = vld [vmem:[#allocation8 + $0x20] sm:$0xff] }
 0x1e1   :  { %1521 = vpow2.f32 %v272_v61  ;;  %v479_v61 = vrot.slane %v408_v60, 4  ;;  %v586_v30 = vrot.slane %v515_v29, 4 }
 0x1e2   :  { %v191_v47 = vsel %vm190_vm4, %v182_v46, %v81_v17  ;;  %v378_v32 = vsub.f32 %v301_v25, %v377_v31  ;;  %v390_v54 = vadd.f32 %v377_v31, %v1730_v48 }
 0x1e3   :  { %1448 = vmatpush3.msra.mxu1 %v191_v47  ;;  %v587_v31 = vmax.f32 %v515_v29, %v586_v30 }
 0x1e4   :  { %1450 = vmatmul.mubr.msk.f32.vlgmr.msra.gmra.mxu1 %vm49_vm1, %v1700_v18  ;;  %1457 = vmatprep.subr.mxu1 %v1660_v19  ;;  %v379_v33 = vmul.f32 1.442695, %v378_v32 }
 0x1e5   :  { %1459 = vmatprep.mubr.msk.f32.mxu1 %vm1661_vm2, %v1660_v19  ;;  %v588_v32 = vrot.slane %v587_v31, 2 }
 0x1ed   :  { %v1520_v50 = vpop.eup %1519 }
 0x1ee   :  { %v179_v51 = vmul.f32 0.6931472, %v1520_v50  ;;  %v1522_v62 = vpop.eup %1521 }
 0x1f0   :  { %v180_v52 = vsub.f32 %v177_v49, %v179_v51  ;;  %v399_v49 = vsel %vm398_vm7, 1, %v1662_v42 }
 0x1f1   :  { %v403_v50 = vrot.slane %v399_v49, %v1719_v41 }
 0x1f2   :  { %v181_v17 = vadd.f32 %v180_v52, %v82_v14 }
 0x1f3   :  { %vm404_vm8 = vcmp.eq.s32.totalorder %v403_v50, 1 }
 0x1f4   :  { %v192_v22 = vsel %vm184_vm3, %v181_v17, %v82_v14  ;;  %vm933_vm3 = vcmp.gt.s32.totalorder %v1716_v40, 7 }
 0x2a4   :  { %v261_v63 = vpop.f32.mrf.mxu1 }
 0x2a5   :  { %v274_v0 = vmul.f32 %v1522_v62, %v261_v63  ;;  %v480_v62 = vmax.f32 %v408_v60, %v479_v61 }
 0x2a6   :  { %v1451_v1 = vpop.f32.mrf.mxu1 }
 0x2a7   :  { %v275_v2 = vrot.slane %v274_v0, 4  ;;  %v481_v63 = vrot.slane %v480_v62, 2 }
 0x2a9   :  { %v276_v3 = vmax.f32 %v274_v0, %v275_v2 }
 0x2ab   :  { %v277_v4 = vrot.slane %v276_v3, 2 }
 0x2ad   :  { %v278_v5 = vmax.f32 %v276_v3, %v277_v4 }
 0x2af   :  { %v279_v6 = vrot.slane %v278_v5, 1 }
 0x2b1   :  { %v280_v7 = vmax.f32 %v278_v5, %v279_v6 }
 0x2b3   :  { %v281_v8 = vmax.f32 %v280_v7, 1e-30 }
 0x2b5   :  { %1523 = vrcp.f32 %v281_v8 }
 0x2c2   :  { %v1524_v11 = vpop.eup %1523 }
 0x2c3   :  { %v288_v12 = vmul.f32 %v1524_v11, %v274_v0  ;;  %1525 = vlog2.f32 %v1524_v11  ;;  %v482_v0 = vmax.f32 %v480_v62, %v481_v63 }
 0x2c4   :  { %1527 = vpow2.f32 %v379_v33  ;;  %v589_v33 = vmax.f32 %v587_v31, %v588_v32 }
 0x2c5   :  { %v298_v13 = vsel %vm297_vm6, %v288_v12, %v191_v47  ;;  %v483_v1 = vrot.slane %v482_v0, 1 }
 0x2c6   :  { %1453 = vmatpush3.msra.mxu0 %v298_v13 }
 0x2c7   :  { %1455 = vmatmul.mubr.msk.f32.vlgmr.msra.gmra.mxu0 %vm49_vm1, %v1700_v18  ;;  %1462 = vmatprep.subr.mxu0 %v1660_v19  ;;  %v484_v2 = vmax.f32 %v482_v0, %v483_v1  ;;  %v622_v0 = vld [vmem:[#allocation8 + $0x28] sm:$0xff] }
 0x2c8   :  { %1464 = vmatprep.mubr.msk.f32.mxu0 %vm1661_vm2, %v1660_v19  ;;  %v693_v1 = vrot.slane %v622_v0, 4 }
 0x2c9   :  { %v485_v3 = vsub.f32 %v408_v60, %v484_v2 }
 0x2cb   :  { %v486_v4 = vmul.f32 1.442695, %v485_v3 }
 0x2d0   :  { %v1526_v16 = vpop.eup %1525 }
 0x2d1   :  { %v285_v20 = vmul.f32 0.6931472, %v1526_v16  ;;  %v1528_v34 = vpop.eup %1527  ;;  %v506_v16 = vsel %vm505_vm9, 1, %v1662_v42 }
 0x2d2   :  { %v510_v17 = vrot.slane %v506_v16, %v1719_v41 }
 0x2d3   :  { %v286_v21 = vsub.f32 %v283_v15, %v285_v20 }
 0x2d4   :  { %vm511_vm10 = vcmp.eq.s32.totalorder %v510_v17, 1 }
 0x2d5   :  { %v287_v23 = vadd.f32 %v286_v21, %v192_v22 }
 0x2d7   :  { %v299_v24 = vsel %vm291_vm5, %v287_v23, %v192_v22  ;;  %v497_v23 = vadd.f32 %v484_v2, %v1730_v48  ;;  %v694_v2 = vmax.f32 %v622_v0, %v693_v1  ;;  %vm1040_vm5 = vcmp.gt.s32.totalorder %v1716_v40, 8 }
 0x2d9   :  { %v695_v3 = vrot.slane %v694_v2, 2 }
 0x387   :  { %v368_v35 = vpop.f32.mrf.mxu0 }
 0x388   :  { %v381_v36 = vmul.f32 %v1528_v34, %v368_v35  ;;  %v590_v34 = vrot.slane %v589_v33, 1 }
 0x389   :  { %v1456_v37 = vpop.f32.mrf.mxu0 }
 0x38a   :  { %v382_v38 = vrot.slane %v381_v36, 4  ;;  %v591_v35 = vmax.f32 %v589_v33, %v590_v34  ;;  %v729_v33 = vld [vmem:[#allocation8 + $0x30] sm:$0xff] }
 0x38b   :  { %v800_v34 = vrot.slane %v729_v33, 4 }
 0x38c   :  { %v383_v39 = vmax.f32 %v381_v36, %v382_v38 }
 0x38e   :  { %v384_v43 = vrot.slane %v383_v39, 2 }
 0x390   :  { %v385_v44 = vmax.f32 %v383_v39, %v384_v43 }
 0x392   :  { %v386_v45 = vrot.slane %v385_v44, 1 }
 0x394   :  { %v387_v46 = vmax.f32 %v385_v44, %v386_v45 }
 0x396   :  { %v388_v47 = vmax.f32 %v387_v46, 1e-30 }
 0x398   :  { %1529 = vrcp.f32 %v388_v47 }
 0x3a5   :  { %v1530_v51 = vpop.eup %1529 }
 0x3a6   :  { %v395_v52 = vmul.f32 %v1530_v51, %v381_v36  ;;  %1531 = vlog2.f32 %v1530_v51  ;;  %v592_v36 = vsub.f32 %v515_v29, %v591_v35 }
 0x3a7   :  { %1533 = vpow2.f32 %v486_v4  ;;  %v696_v4 = vmax.f32 %v694_v2, %v695_v3 }
 0x3a8   :  { %v405_v53 = vsel %vm404_vm8, %v395_v52, %v298_v13  ;;  %v593_v37 = vmul.f32 1.442695, %v592_v36  ;;  %vm1254_vm8 = vcmp.gt.s32.totalorder %v1716_v40, 10 }
 0x3a9   :  { %1458 = vmatpush3.msra.mxu1 %v405_v53 }
 0x3aa   :  { %1460 = vmatmul.mubr.msk.f32.vlgmr.msra.gmra.mxu1 %vm49_vm1, %v1700_v18  ;;  %1467 = vmatprep.subr.mxu1 %v1660_v19 }
 0x3ab   :  { %1469 = vmatprep.mubr.msk.f32.mxu1 %vm1661_vm2, %v1660_v19 }
 0x3b3   :  { %v1532_v55 = vpop.eup %1531 }
 0x3b4   :  { %v392_v56 = vmul.f32 0.6931472, %v1532_v55  ;;  %v1534_v5 = vpop.eup %1533 }
 0x3b6   :  { %v393_v57 = vsub.f32 %v390_v54, %v392_v56 }
 0x3b8   :  { %v394_v58 = vadd.f32 %v393_v57, %v299_v24 }
 0x3ba   :  { %v406_v59 = vsel %vm398_vm7, %v394_v58, %v299_v24  ;;  %v604_v58 = vadd.f32 %v591_v35, %v1730_v48  ;;  %v801_v35 = vmax.f32 %v729_v33, %v800_v34 }
 0x3bc   :  { %v802_v36 = vrot.slane %v801_v35, 2 }
 0x46a   :  { %v475_v6 = vpop.f32.mrf.mxu1 }
 0x46b   :  { %v488_v7 = vmul.f32 %v1534_v5, %v475_v6  ;;  %v697_v5 = vrot.slane %v696_v4, 1 }
 0x46c   :  { %v1461_v8 = vpop.f32.mrf.mxu1 }
 0x46d   :  { %v489_v9 = vrot.slane %v488_v7, 4  ;;  %v698_v6 = vmax.f32 %v696_v4, %v697_v5  ;;  %v836_v4 = vld [vmem:[#allocation8 + $0x38] sm:$0xff] }
 0x46e   :  { %v907_v5 = vrot.slane %v836_v4, 4 }
 0x46f   :  { %v490_v10 = vmax.f32 %v488_v7, %v489_v9 }
 0x471   :  { %v491_v11 = vrot.slane %v490_v10, 2 }
 0x473   :  { %v492_v12 = vmax.f32 %v490_v10, %v491_v11 }
 0x475   :  { %v493_v13 = vrot.slane %v492_v12, 1 }
 0x477   :  { %v494_v14 = vmax.f32 %v492_v12, %v493_v13 }
 0x479   :  { %v495_v15 = vmax.f32 %v494_v14, 1e-30 }
 0x47b   :  { %1535 = vrcp.f32 %v495_v15 }
 0x488   :  { %v1536_v20 = vpop.eup %1535 }
 0x489   :  { %v502_v21 = vmul.f32 %v1536_v20, %v488_v7  ;;  %1537 = vlog2.f32 %v1536_v20  ;;  %v699_v7 = vsub.f32 %v622_v0, %v698_v6 }
 0x48a   :  { %1539 = vpow2.f32 %v593_v37  ;;  %v803_v37 = vmax.f32 %v801_v35, %v802_v36 }
 0x48b   :  { %v512_v22 = vsel %vm511_vm10, %v502_v21, %v405_v53  ;;  %v613_v53 = vsel %vm612_vm11, 1, %v1662_v42  ;;  %v700_v8 = vmul.f32 1.442695, %v699_v7 }
 0x48c   :  { %1463 = vmatpush3.msra.mxu0 %v512_v22  ;;  %v617_v54 = vrot.slane %v613_v53, %v1719_v41 }
 0x48d   :  { %1465 = vmatmul.mubr.msk.f32.vlgmr.msra.gmra.mxu0 %vm49_vm1, %v1700_v18  ;;  %1472 = vmatprep.subr.mxu0 %v1660_v19 }
 0x48e   :  { %1474 = vmatprep.mubr.msk.f32.mxu0 %vm1661_vm2, %v1660_v19  ;;  %vm618_vm12 = vcmp.eq.s32.totalorder %v617_v54, 1 }
 0x496   :  { %v1538_v24 = vpop.eup %1537 }
 0x497   :  { %v499_v25 = vmul.f32 0.6931472, %v1538_v24  ;;  %v1540_v38 = vpop.eup %1539 }
 0x499   :  { %v500_v26 = vsub.f32 %v497_v23, %v499_v25 }
 0x49b   :  { %v501_v27 = vadd.f32 %v500_v26, %v406_v59 }
 0x49d   :  { %v513_v28 = vsel %vm505_vm9, %v501_v27, %v406_v59  ;;  %v711_v27 = vadd.f32 %v698_v6, %v1730_v48  ;;  %v908_v6 = vmax.f32 %v836_v4, %v907_v5 }
 0x49f   :  { %v909_v7 = vrot.slane %v908_v6, 2 }
 0x54d   :  { %v582_v39 = vpop.f32.mrf.mxu0 }
 0x54e   :  { %v595_v43 = vmul.f32 %v1540_v38, %v582_v39  ;;  %v804_v38 = vrot.slane %v803_v37, 1 }
 0x54f   :  { %v1466_v44 = vpop.f32.mrf.mxu0 }
 0x550   :  { %v596_v45 = vrot.slane %v595_v43, 4  ;;  %v805_v39 = vmax.f32 %v803_v37, %v804_v38  ;;  %v943_v37 = vld [vmem:[#allocation8 + $0x40] sm:$0xff] }
 0x551   :  { %v1014_v38 = vrot.slane %v943_v37, 4 }
 0x552   :  { %v597_v46 = vmax.f32 %v595_v43, %v596_v45 }
 0x554   :  { %v598_v47 = vrot.slane %v597_v46, 2 }
 0x556   :  { %v599_v49 = vmax.f32 %v597_v46, %v598_v47 }
 0x558   :  { %v600_v50 = vrot.slane %v599_v49, 1 }
 0x55a   :  { %v601_v51 = vmax.f32 %v599_v49, %v600_v50 }
 0x55c   :  { %v602_v52 = vmax.f32 %v601_v51, 1e-30 }
 0x55e   :  { %1541 = vrcp.f32 %v602_v52 }
 0x56b   :  { %v1542_v55 = vpop.eup %1541 }
 0x56c   :  { %v609_v56 = vmul.f32 %v1542_v55, %v595_v43  ;;  %1543 = vlog2.f32 %v1542_v55  ;;  %v806_v43 = vsub.f32 %v729_v33, %v805_v39 }
 0x56d   :  { %1545 = vpow2.f32 %v700_v8  ;;  %v910_v8 = vmax.f32 %v908_v6, %v909_v7 }
 0x56e   :  { %v619_v57 = vsel %vm618_vm12, %v609_v56, %v512_v22  ;;  %v720_v22 = vsel %vm719_vm13, 1, %v1662_v42  ;;  %v807_v44 = vmul.f32 1.442695, %v806_v43 }
 0x56f   :  { %1468 = vmatpush3.msra.mxu1 %v619_v57  ;;  %v724_v23 = vrot.slane %v720_v22, %v1719_v41 }
 0x570   :  { %1470 = vmatmul.mubr.msk.f32.vlgmr.msra.gmra.mxu1 %vm49_vm1, %v1700_v18  ;;  %1477 = vmatprep.subr.mxu1 %v1660_v19 }
 0x571   :  { %1479 = vmatprep.mubr.msk.f32.mxu1 %vm1661_vm2, %v1660_v19  ;;  %vm725_vm14 = vcmp.eq.s32.totalorder %v724_v23, 1 }
 0x579   :  { %v1544_v59 = vpop.eup %1543 }
 0x57a   :  { %v606_v60 = vmul.f32 0.6931472, %v1544_v59  ;;  %v1546_v9 = vpop.eup %1545 }
 0x57c   :  { %v607_v61 = vsub.f32 %v604_v58, %v606_v60 }
 0x57e   :  { %v608_v62 = vadd.f32 %v607_v61, %v513_v28 }
 0x580   :  { %v620_v63 = vsel %vm612_vm11, %v608_v62, %v513_v28  ;;  %v818_v62 = vadd.f32 %v805_v39, %v1730_v48  ;;  %v1015_v39 = vmax.f32 %v943_v37, %v1014_v38 }
 0x582   :  { %v1016_v43 = vrot.slane %v1015_v39, 2 }
 0x630   :  { %v689_v10 = vpop.f32.mrf.mxu1 }
 0x631   :  { %v702_v11 = vmul.f32 %v1546_v9, %v689_v10  ;;  %v911_v9 = vrot.slane %v910_v8, 1 }
 0x632   :  { %v1471_v12 = vpop.f32.mrf.mxu1 }
 0x633   :  { %v703_v13 = vrot.slane %v702_v11, 4  ;;  %v912_v10 = vmax.f32 %v910_v8, %v911_v9  ;;  %v1050_v8 = vld [vmem:[#allocation8 + $0x48] sm:$0xff] }
 0x634   :  { %v1121_v9 = vrot.slane %v1050_v8, 4 }
 0x635   :  { %v704_v14 = vmax.f32 %v702_v11, %v703_v13 }
 0x637   :  { %v705_v15 = vrot.slane %v704_v14, 2 }
 0x639   :  { %v706_v16 = vmax.f32 %v704_v14, %v705_v15 }
 0x63b   :  { %v707_v17 = vrot.slane %v706_v16, 1 }
 0x63d   :  { %v708_v20 = vmax.f32 %v706_v16, %v707_v17 }
 0x63f   :  { %v709_v21 = vmax.f32 %v708_v20, 1e-30 }
 0x641   :  { %1547 = vrcp.f32 %v709_v21 }
 0x64e   :  { %v1548_v24 = vpop.eup %1547 }
 0x64f   :  { %v716_v25 = vmul.f32 %v1548_v24, %v702_v11  ;;  %1549 = vlog2.f32 %v1548_v24  ;;  %v913_v11 = vsub.f32 %v836_v4, %v912_v10 }
 0x650   :  { %1551 = vpow2.f32 %v807_v44  ;;  %v1017_v44 = vmax.f32 %v1015_v39, %v1016_v43  ;;  %v1157_v43 = vld [vmem:[#allocation8 + $0x50] sm:$0xff] }
 0x651   :  { %v726_v26 = vsel %vm725_vm14, %v716_v25, %v619_v57  ;;  %v827_v57 = vsel %vm826_vm15, 1, %v1662_v42  ;;  %v914_v12 = vmul.f32 1.442695, %v913_v11 }
 0x652   :  { %1473 = vmatpush3.msra.mxu0 %v726_v26  ;;  %v831_v58 = vrot.slane %v827_v57, %v1719_v41 }
 0x653   :  { %1475 = vmatmul.mubr.msk.f32.vlgmr.msra.gmra.mxu0 %vm49_vm1, %v1700_v18  ;;  %1482 = vmatprep.subr.mxu0 %v1660_v19 }
 0x654   :  { %1484 = vmatprep.mubr.msk.f32.mxu0 %vm1661_vm2, %v1660_v19  ;;  %vm832_vm0 = vcmp.eq.s32.totalorder %v831_v58, 1 }
 0x65c   :  { %v1550_v28 = vpop.eup %1549 }
 0x65d   :  { %v713_v29 = vmul.f32 0.6931472, %v1550_v28  ;;  %v1552_v45 = vpop.eup %1551 }
 0x65f   :  { %v714_v30 = vsub.f32 %v711_v27, %v713_v29 }
 0x661   :  { %v715_v31 = vadd.f32 %v714_v30, %v620_v63 }
 0x663   :  { %v727_v32 = vsel %vm719_vm13, %v715_v31, %v620_v63  ;;  %v925_v31 = vadd.f32 %v912_v10, %v1730_v48  ;;  %v1122_v10 = vmax.f32 %v1050_v8, %v1121_v9 }
 0x665   :  { %v1123_v11 = vrot.slane %v1122_v10, 2 }
 0x713   :  { %v796_v46 = vpop.f32.mrf.mxu0 }
 0x714   :  { %v809_v47 = vmul.f32 %v1552_v45, %v796_v46  ;;  %v1018_v45 = vrot.slane %v1017_v44, 1 }
 0x715   :  { %v1476_v49 = vpop.f32.mrf.mxu0 }
 0x716   :  { %v810_v50 = vrot.slane %v809_v47, 4  ;;  %v1019_v46 = vmax.f32 %v1017_v44, %v1018_v45  ;;  %v1228_v44 = vrot.slane %v1157_v43, 4 }
 0x718   :  { %v811_v51 = vmax.f32 %v809_v47, %v810_v50  ;;  %v1229_v45 = vmax.f32 %v1157_v43, %v1228_v44 }
 0x71a   :  { %v812_v52 = vrot.slane %v811_v51, 2 }
 0x71c   :  { %v813_v53 = vmax.f32 %v811_v51, %v812_v52 }
 0x71e   :  { %v814_v54 = vrot.slane %v813_v53, 1 }
 0x720   :  { %v815_v55 = vmax.f32 %v813_v53, %v814_v54 }
 0x722   :  { %v816_v56 = vmax.f32 %v815_v55, 1e-30 }
 0x724   :  { %1553 = vrcp.f32 %v816_v56 }
 0x731   :  { %v1554_v59 = vpop.eup %1553 }
 0x732   :  { %v823_v60 = vmul.f32 %v1554_v59, %v809_v47  ;;  %1555 = vlog2.f32 %v1554_v59  ;;  %v1020_v47 = vsub.f32 %v943_v37, %v1019_v46 }
 0x733   :  { %1557 = vpow2.f32 %v914_v12  ;;  %v1124_v12 = vmax.f32 %v1122_v10, %v1123_v11  ;;  %v1264_v11 = vld [vmem:[#allocation8 + $0x58] sm:$0xff] }
 0x734   :  { %v833_v61 = vsel %vm832_vm0, %v823_v60, %v726_v26  ;;  %v934_v26 = vsel %vm933_vm3, 1, %v1662_v42  ;;  %v1021_v49 = vmul.f32 1.442695, %v1020_v47 }
 0x735   :  { %1478 = vmatpush3.msra.mxu1 %v833_v61  ;;  %v938_v27 = vrot.slane %v934_v26, %v1719_v41 }
 0x736   :  { %1480 = vmatmul.mubr.msk.f32.vlgmr.msra.gmra.mxu1 %vm49_vm1, %v1700_v18  ;;  %1487 = vmatprep.subr.mxu1 %v1660_v19 }
 0x737   :  { %1489 = vmatprep.mubr.msk.f32.mxu1 %vm1661_vm2, %v1660_v19  ;;  %vm939_vm4 = vcmp.eq.s32.totalorder %v938_v27, 1 }
 0x73f   :  { %v1556_v63 = vpop.eup %1555 }
 0x740   :  { %v820_v0 = vmul.f32 0.6931472, %v1556_v63  ;;  %v1558_v13 = vpop.eup %1557 }
 0x742   :  { %v821_v1 = vsub.f32 %v818_v62, %v820_v0 }
 0x744   :  { %v822_v2 = vadd.f32 %v821_v1, %v727_v32 }
 0x746   :  { %v834_v3 = vsel %vm826_vm15, %v822_v2, %v727_v32  ;;  %v1032_v2 = vadd.f32 %v1019_v46, %v1730_v48  ;;  %v1230_v46 = vrot.slane %v1229_v45, 2 }
 0x748   :  { %v1231_v47 = vmax.f32 %v1229_v45, %v1230_v46 }
 0x7f6   :  { %v903_v14 = vpop.f32.mrf.mxu1 }
 0x7f7   :  { %v916_v15 = vmul.f32 %v1558_v13, %v903_v14  ;;  %v1125_v13 = vrot.slane %v1124_v12, 1 }
 0x7f8   :  { %v1481_v16 = vpop.f32.mrf.mxu1 }
 0x7f9   :  { %v917_v17 = vrot.slane %v916_v15, 4  ;;  %v1126_v14 = vmax.f32 %v1124_v12, %v1125_v13  ;;  %v1335_v12 = vrot.slane %v1264_v11, 4 }
 0x7fb   :  { %v918_v20 = vmax.f32 %v916_v15, %v917_v17  ;;  %v1336_v13 = vmax.f32 %v1264_v11, %v1335_v12 }
 0x7fd   :  { %v919_v21 = vrot.slane %v918_v20, 2 }
 0x7ff   :  { %v920_v22 = vmax.f32 %v918_v20, %v919_v21 }
 0x801   :  { %v921_v23 = vrot.slane %v920_v22, 1 }
 0x803   :  { %v922_v24 = vmax.f32 %v920_v22, %v921_v23 }
 0x805   :  { %v923_v25 = vmax.f32 %v922_v24, 1e-30 }
 0x807   :  { %1559 = vrcp.f32 %v923_v25 }
 0x814   :  { %v1560_v28 = vpop.eup %1559 }
 0x815   :  { %v930_v29 = vmul.f32 %v1560_v28, %v916_v15  ;;  %1561 = vlog2.f32 %v1560_v28  ;;  %v1127_v15 = vsub.f32 %v1050_v8, %v1126_v14 }
 0x816   :  { %1563 = vpow2.f32 %v1021_v49  ;;  %v1232_v49 = vrot.slane %v1231_v47, 1 }
 0x817   :  { %v940_v30 = vsel %vm939_vm4, %v930_v29, %v833_v61  ;;  %v1041_v61 = vsel %vm1040_vm5, 1, %v1662_v42  ;;  %v1128_v16 = vmul.f32 1.442695, %v1127_v15 }
 0x818   :  { %1483 = vmatpush3.msra.mxu0 %v940_v30  ;;  %v1045_v62 = vrot.slane %v1041_v61, %v1719_v41 }
 0x819   :  { %1485 = vmatmul.mubr.msk.f32.vlgmr.msra.gmra.mxu0 %vm49_vm1, %v1700_v18  ;;  %1492 = vmatprep.subr.mxu0 %v1660_v19 }
 0x81a   :  { %1494 = vmatprep.mubr.msk.f32.mxu0 %vm1661_vm2, %v1660_v19  ;;  %vm1046_vm6 = vcmp.eq.s32.totalorder %v1045_v62, 1 }
 0x822   :  { %v1562_v32 = vpop.eup %1561 }
 0x823   :  { %v927_v33 = vmul.f32 0.6931472, %v1562_v32  ;;  %v1564_v50 = vpop.eup %1563 }
 0x825   :  { %v928_v34 = vsub.f32 %v925_v31, %v927_v33 }
 0x827   :  { %v929_v35 = vadd.f32 %v928_v34, %v834_v3  ;;  %v1139_v34 = vadd.f32 %v1126_v14, %v1730_v48  ;;  %v1337_v14 = vrot.slane %v1336_v13, 2 }
 0x829   :  { %v941_v36 = vsel %vm933_vm3, %v929_v35, %v834_v3  ;;  %v1338_v15 = vmax.f32 %v1336_v13, %v1337_v14 }
 0x8d9   :  { %v1010_v51 = vpop.f32.mrf.mxu0 }
 0x8da   :  { %v1023_v52 = vmul.f32 %v1564_v50, %v1010_v51  ;;  %v1233_v50 = vmax.f32 %v1231_v47, %v1232_v49 }
 0x8db   :  { %v1486_v53 = vpop.f32.mrf.mxu0 }
 0x8dc   :  { %v1024_v54 = vrot.slane %v1023_v52, 4  ;;  %v1234_v51 = vsub.f32 %v1157_v43, %v1233_v50 }
 0x8de   :  { %v1025_v55 = vmax.f32 %v1023_v52, %v1024_v54 }
 0x8e0   :  { %v1026_v56 = vrot.slane %v1025_v55, 2 }
 0x8e2   :  { %v1027_v57 = vmax.f32 %v1025_v55, %v1026_v56 }
 0x8e4   :  { %v1028_v58 = vrot.slane %v1027_v57, 1 }
 0x8e6   :  { %v1029_v59 = vmax.f32 %v1027_v57, %v1028_v58 }
 0x8e8   :  { %v1030_v60 = vmax.f32 %v1029_v59, 1e-30 }
 0x8ea   :  { %1565 = vrcp.f32 %v1030_v60 }
 0x8f7   :  { %v1566_v63 = vpop.eup %1565 }
 0x8f8   :  { %v1037_v0 = vmul.f32 %v1566_v63, %v1023_v52  ;;  %1567 = vlog2.f32 %v1566_v63  ;;  %v1235_v52 = vmul.f32 1.442695, %v1234_v51 }
 0x8f9   :  { %1569 = vpow2.f32 %v1128_v16  ;;  %v1339_v16 = vrot.slane %v1338_v15, 1 }
 0x8fa   :  { %v1047_v1 = vsel %vm1046_vm6, %v1037_v0, %v940_v30  ;;  %v1255_v0 = vsel %vm1254_vm8, 1, %v1662_v42 }
 0x8fb   :  { %1488 = vmatpush3.msra.mxu1 %v1047_v1 }
 0x8fc   :  { %1490 = vmatmul.mubr.msk.f32.vlgmr.msra.gmra.mxu1 %vm49_vm1, %v1700_v18  ;;  %1497 = vmatprep.subr.mxu1 %v1660_v19 }
 0x8fd   :  { %1499 = vmatprep.mubr.msk.f32.mxu1 %vm1661_vm2, %v1660_v19  ;;  %vm1147_vm2 = vcmp.gt.s32.totalorder %v1716_v40, 9 }
 0x8fe   :  { %v1148_v29 = vsel %vm1147_vm2, 1, %v1662_v42 }
 0x8ff   :  { %v1152_v30 = vrot.slane %v1148_v29, %v1719_v41 }
 0x901   :  { %vm1153_vm7 = vcmp.eq.s32.totalorder %v1152_v30, 1 }
 0x905   :  { %v1568_v3 = vpop.eup %1567 }
 0x906   :  { %v1034_v4 = vmul.f32 0.6931472, %v1568_v3  ;;  %v1570_v19 = vpop.eup %1569 }
 0x908   :  { %v1035_v5 = vsub.f32 %v1032_v2, %v1034_v4 }
 0x90a   :  { %v1036_v6 = vadd.f32 %v1035_v5, %v941_v36  ;;  %v1246_v5 = vadd.f32 %v1233_v50, %v1730_v48 }
 0x90c   :  { %v1048_v7 = vsel %vm1040_vm5, %v1036_v6, %v941_v36 }
 0x9bc   :  { %v1117_v17 = vpop.f32.mrf.mxu1 }
 0x9bd   :  { %v1130_v20 = vmul.f32 %v1570_v19, %v1117_v17  ;;  %v1340_v19 = vmax.f32 %v1338_v15, %v1339_v16 }
 0x9be   :  { %v1491_v21 = vpop.f32.mrf.mxu1 }
 0x9bf   :  { %v1131_v22 = vrot.slane %v1130_v20, 4  ;;  %v1341_v17 = vsub.f32 %v1264_v11, %v1340_v19 }
 0x9c1   :  { %v1132_v23 = vmax.f32 %v1130_v20, %v1131_v22 }
 0x9c3   :  { %v1133_v24 = vrot.slane %v1132_v23, 2 }
 0x9c5   :  { %v1134_v25 = vmax.f32 %v1132_v23, %v1133_v24 }
 0x9c7   :  { %v1135_v26 = vrot.slane %v1134_v25, 1 }
 0x9c9   :  { %v1136_v27 = vmax.f32 %v1134_v25, %v1135_v26 }
 0x9cb   :  { %v1137_v28 = vmax.f32 %v1136_v27, 1e-30 }
 0x9cd   :  { %1571 = vrcp.f32 %v1137_v28 }
 0x9da   :  { %v1572_v31 = vpop.eup %1571 }
 0x9db   :  { %v1144_v32 = vmul.f32 %v1572_v31, %v1130_v20  ;;  %1573 = vlog2.f32 %v1572_v31  ;;  %v1342_v20 = vmul.f32 1.442695, %v1341_v17 }
 0x9dc   :  { %1575 = vpow2.f32 %v1235_v52 }
 0x9dd   :  { %v1154_v33 = vsel %vm1153_vm7, %v1144_v32, %v1047_v1  ;;  %v1259_v1 = vrot.slane %v1255_v0, %v1719_v41 }
 0x9de   :  { %1493 = vmatpush3.msra.mxu0 %v1154_v33 }
 0x9df   :  { %1495 = vmatmul.mubr.msk.f32.vlgmr.msra.gmra.mxu0 %vm49_vm1, %v1700_v18  ;;  %vm1260_vm9 = vcmp.eq.s32.totalorder %v1259_v1, 1 }
 0x9e8   :  { %v1574_v35 = vpop.eup %1573 }
 0x9e9   :  { %v1141_v36 = vmul.f32 0.6931472, %v1574_v35  ;;  %v1576_v53 = vpop.eup %1575 }
 0x9eb   :  { %v1142_v37 = vsub.f32 %v1139_v34, %v1141_v36  ;;  %v1353_v36 = vadd.f32 %v1340_v19, %v1730_v48 }
 0x9ed   :  { %v1143_v38 = vadd.f32 %v1142_v37, %v1048_v7 }
 0x9ef   :  { %v1155_v39 = vsel %vm1147_vm2, %v1143_v38, %v1048_v7 }
 0xa9f   :  { %v1224_v54 = vpop.f32.mrf.mxu0 }
 0xaa0   :  { %v1237_v55 = vmul.f32 %v1576_v53, %v1224_v54 }
 0xaa1   :  { %v1496_v56 = vpop.f32.mrf.mxu0 }
 0xaa2   :  { %v1238_v57 = vrot.slane %v1237_v55, 4 }
 0xaa4   :  { %v1239_v58 = vmax.f32 %v1237_v55, %v1238_v57 }
 0xaa6   :  { %v1240_v59 = vrot.slane %v1239_v58, 2 }
 0xaa8   :  { %v1241_v60 = vmax.f32 %v1239_v58, %v1240_v59 }
 0xaaa   :  { %v1242_v61 = vrot.slane %v1241_v60, 1 }
 0xaac   :  { %v1243_v62 = vmax.f32 %v1241_v60, %v1242_v61 }
 0xaae   :  { %v1244_v63 = vmax.f32 %v1243_v62, 1e-30 }
 0xab0   :  { %1577 = vrcp.f32 %v1244_v63 }
 0xabd   :  { %v1578_v2 = vpop.eup %1577 }
 0xabe   :  { %v1251_v3 = vmul.f32 %v1578_v2, %v1237_v55  ;;  %1579 = vlog2.f32 %v1578_v2 }
 0xabf   :  { %1581 = vpow2.f32 %v1342_v20 }
 0xac0   :  { %v1261_v4 = vsel %vm1260_vm9, %v1251_v3, %v1154_v33 }
 0xac1   :  { %1498 = vmatpush3.msra.mxu1 %v1261_v4 }
 0xac2   :  { %1500 = vmatmul.mubr.msk.f32.vlgmr.msra.gmra.mxu1 %vm49_vm1, %v1700_v18  ;;  %vm1361_vm1 = vcmp.gt.s32.totalorder %v1716_v40, 11 }
 0xac3   :  { %v1362_v31 = vsel %vm1361_vm1, 1, %v1662_v42 }
 0xac4   :  { %v1366_v32 = vrot.slane %v1362_v31, %v1719_v41 }
 0xac6   :  { %vm1367_vm10 = vcmp.eq.s32.totalorder %v1366_v32, 1 }
 0xacb   :  { %v1580_v6 = vpop.eup %1579 }
 0xacc   :  { %v1248_v7 = vmul.f32 0.6931472, %v1580_v6  ;;  %v1582_v21 = vpop.eup %1581 }
 0xace   :  { %v1249_v8 = vsub.f32 %v1246_v5, %v1248_v7 }
 0xad0   :  { %v1250_v9 = vadd.f32 %v1249_v8, %v1155_v39 }
 0xad2   :  { %v1262_v10 = vsel %vm1254_vm8, %v1250_v9, %v1155_v39 }
 0xb82   :  { %v1331_v22 = vpop.f32.mrf.mxu1 }
 0xb83   :  { %v1344_v18 = vmul.f32 %v1582_v21, %v1331_v22 }
 0xb84   :  { %v1501_v23 = vpop.f32.mrf.mxu1 }
 0xb85   :  { %v1345_v24 = vrot.slane %v1344_v18, 4 }
 0xb87   :  { %v1346_v25 = vmax.f32 %v1344_v18, %v1345_v24 }
 0xb89   :  { %v1347_v26 = vrot.slane %v1346_v25, 2 }
 0xb8b   :  { %v1348_v27 = vmax.f32 %v1346_v25, %v1347_v26 }
 0xb8d   :  { %v1349_v28 = vrot.slane %v1348_v27, 1 }
 0xb8f   :  { %v1350_v29 = vmax.f32 %v1348_v27, %v1349_v28 }
 0xb91   :  { %v1351_v30 = vmax.f32 %v1350_v29, 1e-30 }
 0xb93   :  { %1583 = vrcp.f32 %v1351_v30 }
 0xba0   :  { %v1584_v33 = vpop.eup %1583 }
 0xba1   :  { %1585 = vlog2.f32 %v1584_v33  ;;  %v1358_v34 = vmul.f32 %v1584_v33, %v1344_v18 }
 0xba3   :  { %v1368_v35 = vsel %vm1367_vm10, %v1358_v34, %v1261_v4 }
 0xba4   :  { %1370 = vst [vmem:[#allocation2] sm:$0xff] %v1368_v35 }
 0xbae   :  { %v1586_v37 = vpop.eup %1585 }
 0xbaf   :  { %v1355_v38 = vmul.f32 0.6931472, %v1586_v37 }
 0xbb1   :  { %v1356_v39 = vsub.f32 %v1353_v36, %v1355_v38 }
 0xbb3   :  { %v1357_v43 = vadd.f32 %v1356_v39, %v1262_v10 }
 0xbb5   :  { %v1369_v44 = vsel %vm1361_vm1, %v1357_v43, %v1262_v10 }
 0xbb6   :  { %1371 = vst [vmem:[#allocation3] sm:$0x1] %v1369_v44 }
 0xbb7 PF:  { %v1375_v40 = vld [vmem:[#allocation2] sm:$0xff]  ;;  %s1663_s1 = smov [#allocation13]  }
 0xbb8   :  { %v1376_v45 = vrot.slane %v1375_v40, 4  ;;  %s1394_s30 = sshll.u32 %s1663_s1, 4  ;;  %s1395_s30 = int_to_ptr.vmem [resolvable:$true] %s1394_s30 }
 0xbb9   :  { %s1629_s5 = scalar_lea.vmem %s1395_s30, 16  ;;  %s1633_s6 = scalar_lea.vmem %s1395_s30, 32 }
 0xbba   :  { %v1377_v42 = vadd.f32 %v1376_v45, %v1375_v40  ;;  %p1630_p11 = scmp.ne.s32.totalorder %s1395_s30, %s1629_s5  ;;  %p1634_p12 = scmp.lt.s32.totalorder %s1395_s30, %s1395_s30 }
 0xbbb   :  { %p1635_p13 = scmp.lt.s32.totalorder %s1633_s6, %s1629_s5 }
 0xbbc   :  { %v1378_v46 = vrot.slane %v1377_v42, 2 }
 0xbbd   :  { %v1382_v52 = vld [vmem:[#allocation3] sm:$0x1]  ;;  %p1636_p0 = por %p1635_p13, %p1634_p12 }
 0xbbe   :  { %v1379_v41 = vadd.f32 %v1378_v46, %v1377_v42 }
 0xbbf   :  { %p1637_p1 = pnand %p1636_p0, %p1630_p11 }
 0xbc0   :  { %v1380_v47 = vrot.slane %v1379_v41, 1 }
 0xbc2   :  { %v1381_v49 = vadd.f32 %v1380_v47, %v1379_v41 }
 0xbc4   :  { %v1383_v50 = vmax.f32 %v1381_v49, 1e-30 }
 0xbc6   :  { %1587 = vlog2.f32 %v1383_v50 }
 0xbd3   :  { %v1588_v51 = vpop.eup %1587 }
 0xbd4   :  { %v1385_v48 = vmul.f32 0.6931472, %v1588_v51 }
 0xbd6   :  { %v1386_v53 = vadd.f32 %v1385_v48, %v1382_v52 }
 0xbd8   :  { %1387 = vst [vmem:[#allocation13] sm:$0x1] %v1386_v53 }
 0xbd9   :  { %1640 = shalt.err (!%p1637_p1)
}
 0xbda   :  { %1397 = dma.vmem_to_hbm [thread:$0]  %s1395_s30, 16, %s1862_s4, [#allocation10]  }
 0xbdb   :  { %1653 = dma.done.wait [#allocation10], 16  }
 0xbdc   :  { %1654 = vsyncadd [#allocation10], 4294967280 }
 0xbdd   :  { %1401 = vsyncpa [#allocation9], 1 }
 0xbde   :  { %1402 = vsyncpa [#allocation12], 1 }
 0xbdf   :  { %1403 = vsyncpa [#allocation10], 1 }

</bundles_post_ra>
